<compile_context>
chip_gen: v7x
topology: tpu7x:2x2x1
jax: 0.10.0
libtpu: 0.0.40
codegen_flags: <defaults>
</compile_context>

<pallas_src>
import jax
import jax.numpy as jnp
from jax import lax
from jax.experimental import pallas as pl
from jax.experimental.pallas import tpu as pltpu

B, C, H, W = 2, 4, 16, 16          # batch, channel, patch_height, patch_width
HW = H * W                         # pixels per channel (lane-dense axis = 256)
D = C * HW                         # fc input features
HIDDEN = 20
THETA_DIM = 6
C2 = 2 * C                         # img + target stacked along channels


def local_network_kernel(x_ref, img2_ref, w1_ref, b1_ref, w2_ref, b2_ref,
                         basis_ref, px_ref, py_ref, out_ref):
    # ---- FC head: theta = tanh( dropout(tanh(x W1^T + b1)) W2^T + b2 ) -----
    # Weights are in torch (out, in) layout -> contract dim 1 of both operands.
    x = x_ref[...]                                                  # (1, D)
    h = jnp.tanh(
        lax.dot_general(x, w1_ref[...], (((1,), (1,)), ((), ())),
                        preferred_element_type=jnp.float32)
        + b1_ref[...])                                              # (1, 20)
    # TODO(synk): Dropout is identity at inference; torch training-mode RNG not reproduced.
    theta = jnp.tanh(
        lax.dot_general(h, w2_ref[...], (((1,), (1,)), ((), ())),
                        preferred_element_type=jnp.float32)
        + b2_ref[...])                                              # (1, 6)

    # ---- affine_grid (align_corners=False): [xs | ys] = theta @ basis ------
    sxy = jnp.dot(theta, basis_ref[...],
                  preferred_element_type=jnp.float32)               # (1, 2*HW)
    ix = ((sxy[:, :HW] + 1.0) * W - 1.0) * 0.5                      # (1, HW)
    iy = ((sxy[:, HW:] + 1.0) * H - 1.0) * 0.5                      # (1, HW)

    # ---- grid_sample(bilinear, zeros padding) as one stacked matmul --------
    # M[p, o] = tent(ix[o] - px[p]) * tent(iy[o] - py[p]); out-of-bounds
    # samples simply get zero weight everywhere -> zeros padding for free.
    wx = jnp.maximum(0.0, 1.0 - jnp.abs(ix - px_ref[...]))          # (HW, HW)
    wy = jnp.maximum(0.0, 1.0 - jnp.abs(iy - py_ref[...]))          # (HW, HW)
    m = wx * wy

    out_ref[...] = jnp.dot(img2_ref[...], m,
                           preferred_element_type=jnp.float32)      # (2C, HW)


def _grid_constants():
    """Theta-independent sampling-grid constants (built once, outside kernel)."""
    o = jnp.arange(HW, dtype=jnp.int32)
    jx = (o % W).astype(jnp.float32)             # pixel column
    iy = (o // W).astype(jnp.float32)            # pixel row
    xn = (2.0 * jx + 1.0) / W - 1.0              # normalized base-grid x
    yn = (2.0 * iy + 1.0) / H - 1.0              # normalized base-grid y
    zeros = jnp.zeros((HW,), jnp.float32)
    ones = jnp.ones((HW,), jnp.float32)
    # (t00,t01,t02,t10,t11,t12) @ basis -> [xs (HW) | ys (HW)]
    basis = jnp.stack([
        jnp.concatenate([xn, zeros]),
        jnp.concatenate([yn, zeros]),
        jnp.concatenate([ones, zeros]),
        jnp.concatenate([zeros, xn]),
        jnp.concatenate([zeros, yn]),
        jnp.concatenate([zeros, ones]),
    ], axis=0)                                   # (6, 2*HW)
    px = jx.reshape(HW, 1)                       # input-pixel x, column vector
    py = iy.reshape(HW, 1)                       # input-pixel y, column vector
    return basis, px, py


def local_network_forward(params, img, target):
    b = img.shape[0]
    x_flat = img.reshape(b, 1, D)                                   # torch img.view(b, -1)
    img2 = jnp.concatenate(
        [img.reshape(b, C, HW), target.reshape(b, C, HW)], axis=1)  # (b, 2C, HW)
    basis, px, py = _grid_constants()
    b1 = params["b1"].reshape(1, HIDDEN)
    b2 = params["b2"].reshape(1, THETA_DIM)

    def const_spec(shape):
        n = len(shape)
        return pl.BlockSpec(shape, lambda i: (0,) * n)   # VMEM-resident across grid

    out = pl.pallas_call(
        local_network_kernel,
        grid=(b,),
        in_specs=[
            pl.BlockSpec((None, 1, D), lambda i: (i, 0, 0)),        # x_flat
            pl.BlockSpec((None, C2, HW), lambda i: (i, 0, 0)),      # img+target stacked
            const_spec((HIDDEN, D)),                                # w1 (torch layout)
            const_spec((1, HIDDEN)),                                # b1
            const_spec((THETA_DIM, HIDDEN)),                        # w2 (torch layout)
            const_spec((1, THETA_DIM)),                             # b2
            const_spec((THETA_DIM, 2 * HW)),                        # basis
            const_spec((HW, 1)),                                    # px
            const_spec((HW, 1)),                                    # py
        ],
        out_specs=pl.BlockSpec((None, C2, HW), lambda i: (i, 0, 0)),
        out_shape=jax.ShapeDtypeStruct((b, C2, HW), jnp.float32),
        compiler_params=pltpu.CompilerParams(
            dimension_semantics=("parallel",)),
    )(x_flat, img2, params["w1"], b1, params["w2"], b2, basis, px, py)

    img_tr = out[:, :C, :].reshape(b, C, H, W)
    tgt_tr = out[:, C:, :].reshape(b, C, H, W)
    return img_tr, tgt_tr


def init_params(key):
    k1, k2 = jax.random.split(key)
    # fc[0]: Linear(D -> 20), torch-layout weight (out, in), default uniform init.
    bound1 = 1.0 / (D ** 0.5)
    w1 = jax.random.uniform(k1, (HIDDEN, D), jnp.float32, -bound1, bound1)
    b1 = jax.random.uniform(k2, (HIDDEN,), jnp.float32, -bound1, bound1)
    # fc[3]: Linear(20 -> 6), weight = 0, bias = identity affine (module __init__).
    w2 = jnp.zeros((THETA_DIM, HIDDEN), jnp.float32)
    b2 = jnp.array([1.0, 0.0, 0.0, 0.0, 1.0, 0.0], jnp.float32)
    return {"w1": w1, "b1": b1, "w2": w2, "b2": b2}


if __name__ == "__main__":
    key = jax.random.PRNGKey(0)
    kp, ki, kt = jax.random.split(key, 3)
    params = init_params(kp)
    img = jax.random.normal(ki, (B, C, H, W), jnp.float32)
    target = jax.random.normal(kt, (B, C, H, W), jnp.float32)

    img_tr, tgt_tr = jax.jit(local_network_forward)(params, img, target)
    jax.block_until_ready((img_tr, tgt_tr))

    assert img_tr.shape == (B, C, H, W) and tgt_tr.shape == (B, C, H, W)
    assert bool(jnp.isfinite(img_tr).all()) and bool(jnp.isfinite(tgt_tr).all())
    print("KERNEL_OK")
</pallas_src>

<mosaic_0001>
module attributes {stable_mosaic.version = 11 : i64} {
  func.func @local_network_kernel(%arg0: i32, %arg1: memref<1x1x1024xf32, #tpu.memory_space<vmem>>, %arg2: memref<1x8x256xf32, #tpu.memory_space<vmem>>, %arg3: memref<20x1024xf32, #tpu.memory_space<vmem>>, %arg4: memref<1x20xf32, #tpu.memory_space<vmem>>, %arg5: memref<6x20xf32, #tpu.memory_space<vmem>>, %arg6: memref<1x6xf32, #tpu.memory_space<vmem>>, %arg7: memref<6x512xf32, #tpu.memory_space<vmem>>, %arg8: memref<256x1xf32, #tpu.memory_space<vmem>>, %arg9: memref<256x1xf32, #tpu.memory_space<vmem>>, %arg10: memref<1x8x256xf32, #tpu.memory_space<vmem>>) attributes {dimension_semantics = [#tpu.dimension_semantics<parallel>], iteration_bounds = array<i64: 2>, scalar_prefetch = 0 : i64, scratch_operands = 0 : i64, tpu.core_type = #tpu.core_type<tc>, window_params = [{transform_indices = @transform_0, window_bounds = array<i64: 1, 1, 1024>}, {transform_indices = @transform_1, window_bounds = array<i64: 1, 8, 256>}, {pipeline_mode = #tpu.pipeline_mode<synchronous>, transform_indices = @transform_2, window_bounds = array<i64: 20, 1024>}, {pipeline_mode = #tpu.pipeline_mode<synchronous>, transform_indices = @transform_3, window_bounds = array<i64: 1, 20>}, {pipeline_mode = #tpu.pipeline_mode<synchronous>, transform_indices = @transform_4, window_bounds = array<i64: 6, 20>}, {pipeline_mode = #tpu.pipeline_mode<synchronous>, transform_indices = @transform_5, window_bounds = array<i64: 1, 6>}, {pipeline_mode = #tpu.pipeline_mode<synchronous>, transform_indices = @transform_6, window_bounds = array<i64: 6, 512>}, {pipeline_mode = #tpu.pipeline_mode<synchronous>, transform_indices = @transform_7, window_bounds = array<i64: 256, 1>}, {pipeline_mode = #tpu.pipeline_mode<synchronous>, transform_indices = @transform_8, window_bounds = array<i64: 256, 1>}, {transform_indices = @transform_9, window_bounds = array<i64: 1, 8, 256>}]} {
    %c0 = arith.constant 0 : index
    %c0_0 = arith.constant 0 : index
    %c0_1 = arith.constant 0 : index
    %0 = vector.load %arg1[%c0, %c0_0, %c0_1] : memref<1x1x1024xf32, #tpu.memory_space<vmem>>, vector<1x1x1024xf32>
    %1 = vector.shape_cast %0 : vector<1x1x1024xf32> to vector<1x1024xf32>
    %c0_2 = arith.constant 0 : index
    %c0_3 = arith.constant 0 : index
    %2 = vector.load %arg3[%c0_2, %c0_3] : memref<20x1024xf32, #tpu.memory_space<vmem>>, vector<20x1024xf32>
    %cst = arith.constant dense<0.000000e+00> : vector<1x20xf32>
    %3 = tpu.matmul %1, %2, %cst {dimension_numbers = #tpu.dot_dimension_numbers<[1], [1], [0], [0], [0, 0, 1, 0], [], []>} : vector<1x1024xf32>, vector<20x1024xf32>, vector<1x20xf32> -> vector<1x20xf32>
    %c0_4 = arith.constant 0 : index
    %c0_5 = arith.constant 0 : index
    %4 = vector.load %arg4[%c0_4, %c0_5] : memref<1x20xf32, #tpu.memory_space<vmem>>, vector<1x20xf32>
    %5 = arith.addf %3, %4 : vector<1x20xf32>
    %6 = math.tanh %5 : vector<1x20xf32>
    %c0_6 = arith.constant 0 : index
    %c0_7 = arith.constant 0 : index
    %7 = vector.load %arg5[%c0_6, %c0_7] : memref<6x20xf32, #tpu.memory_space<vmem>>, vector<6x20xf32>
    %cst_8 = arith.constant dense<0.000000e+00> : vector<1x6xf32>
    %8 = tpu.matmul %6, %7, %cst_8 {dimension_numbers = #tpu.dot_dimension_numbers<[1], [1], [0], [0], [0, 0, 1, 0], [], []>} : vector<1x20xf32>, vector<6x20xf32>, vector<1x6xf32> -> vector<1x6xf32>
    %c0_9 = arith.constant 0 : index
    %c0_10 = arith.constant 0 : index
    %9 = vector.load %arg6[%c0_9, %c0_10] : memref<1x6xf32, #tpu.memory_space<vmem>>, vector<1x6xf32>
    %10 = arith.addf %8, %9 : vector<1x6xf32>
    %11 = math.tanh %10 : vector<1x6xf32>
    %c0_11 = arith.constant 0 : index
    %c0_12 = arith.constant 0 : index
    %12 = vector.load %arg7[%c0_11, %c0_12] : memref<6x512xf32, #tpu.memory_space<vmem>>, vector<6x512xf32>
    %cst_13 = arith.constant dense<0.000000e+00> : vector<1x512xf32>
    %13 = tpu.matmul %11, %12, %cst_13 {dimension_numbers = #tpu.dot_dimension_numbers<[1], [0], [0], [1], [0, 0, 1, 1], [], []>} : vector<1x6xf32>, vector<6x512xf32>, vector<1x512xf32> -> vector<1x512xf32>
    %14 = vector.extract_strided_slice %13 {offsets = [0, 0], sizes = [1, 256], strides = [1, 1]} : vector<1x512xf32> to vector<1x256xf32>
    %cst_14 = arith.constant 1.000000e+00 : f32
    %15 = vector.broadcast %cst_14 : f32 to vector<1x256xf32>
    %16 = arith.addf %14, %15 : vector<1x256xf32>
    %cst_15 = arith.constant 1.600000e+01 : f32
    %17 = vector.broadcast %cst_15 : f32 to vector<1x256xf32>
    %18 = arith.mulf %16, %17 : vector<1x256xf32>
    %cst_16 = arith.constant 1.000000e+00 : f32
    %19 = vector.broadcast %cst_16 : f32 to vector<1x256xf32>
    %20 = arith.subf %18, %19 : vector<1x256xf32>
    %cst_17 = arith.constant 5.000000e-01 : f32
    %21 = vector.broadcast %cst_17 : f32 to vector<1x256xf32>
    %22 = arith.mulf %20, %21 : vector<1x256xf32>
    %23 = vector.extract_strided_slice %13 {offsets = [0, 256], sizes = [1, 256], strides = [1, 1]} : vector<1x512xf32> to vector<1x256xf32>
    %cst_18 = arith.constant 1.000000e+00 : f32
    %24 = vector.broadcast %cst_18 : f32 to vector<1x256xf32>
    %25 = arith.addf %23, %24 : vector<1x256xf32>
    %cst_19 = arith.constant 1.600000e+01 : f32
    %26 = vector.broadcast %cst_19 : f32 to vector<1x256xf32>
    %27 = arith.mulf %25, %26 : vector<1x256xf32>
    %cst_20 = arith.constant 1.000000e+00 : f32
    %28 = vector.broadcast %cst_20 : f32 to vector<1x256xf32>
    %29 = arith.subf %27, %28 : vector<1x256xf32>
    %cst_21 = arith.constant 5.000000e-01 : f32
    %30 = vector.broadcast %cst_21 : f32 to vector<1x256xf32>
    %31 = arith.mulf %29, %30 : vector<1x256xf32>
    %c0_22 = arith.constant 0 : index
    %c0_23 = arith.constant 0 : index
    %32 = vector.load %arg8[%c0_22, %c0_23] : memref<256x1xf32, #tpu.memory_space<vmem>>, vector<256x1xf32>
    %33 = vector.broadcast %22 : vector<1x256xf32> to vector<256x256xf32>
    %34 = vector.broadcast %32 : vector<256x1xf32> to vector<256x256xf32>
    %35 = arith.subf %33, %34 : vector<256x256xf32>
    %36 = math.absf %35 : vector<256x256xf32>
    %cst_24 = arith.constant 1.000000e+00 : f32
    %37 = vector.broadcast %cst_24 : f32 to vector<256x256xf32>
    %38 = arith.subf %37, %36 : vector<256x256xf32>
    %cst_25 = arith.constant 0.000000e+00 : f32
    %39 = vector.broadcast %cst_25 : f32 to vector<256x256xf32>
    %40 = arith.maximumf %39, %38 : vector<256x256xf32>
    %c0_26 = arith.constant 0 : index
    %c0_27 = arith.constant 0 : index
    %41 = vector.load %arg9[%c0_26, %c0_27] : memref<256x1xf32, #tpu.memory_space<vmem>>, vector<256x1xf32>
    %42 = vector.broadcast %31 : vector<1x256xf32> to vector<256x256xf32>
    %43 = vector.broadcast %41 : vector<256x1xf32> to vector<256x256xf32>
    %44 = arith.subf %42, %43 : vector<256x256xf32>
    %45 = math.absf %44 : vector<256x256xf32>
    %cst_28 = arith.constant 1.000000e+00 : f32
    %46 = vector.broadcast %cst_28 : f32 to vector<256x256xf32>
    %47 = arith.subf %46, %45 : vector<256x256xf32>
    %cst_29 = arith.constant 0.000000e+00 : f32
    %48 = vector.broadcast %cst_29 : f32 to vector<256x256xf32>
    %49 = arith.maximumf %48, %47 : vector<256x256xf32>
    %50 = arith.mulf %40, %49 : vector<256x256xf32>
    %c0_30 = arith.constant 0 : index
    %c0_31 = arith.constant 0 : index
    %c0_32 = arith.constant 0 : index
    %51 = vector.load %arg2[%c0_30, %c0_31, %c0_32] : memref<1x8x256xf32, #tpu.memory_space<vmem>>, vector<1x8x256xf32>
    %52 = vector.shape_cast %51 : vector<1x8x256xf32> to vector<8x256xf32>
    %cst_33 = arith.constant dense<0.000000e+00> : vector<8x256xf32>
    %53 = tpu.matmul %52, %50, %cst_33 {dimension_numbers = #tpu.dot_dimension_numbers<[1], [0], [0], [1], [0, 0, 1, 1], [], []>} : vector<8x256xf32>, vector<256x256xf32>, vector<8x256xf32> -> vector<8x256xf32>
    %c0_34 = arith.constant 0 : index
    %c0_35 = arith.constant 0 : index
    %c0_36 = arith.constant 0 : index
    %54 = vector.load %arg10[%c0_34, %c0_35, %c0_36] : memref<1x8x256xf32, #tpu.memory_space<vmem>>, vector<1x8x256xf32>
    %55 = vector.shape_cast %54 : vector<1x8x256xf32> to vector<8x256xf32>
    %56 = vector.shape_cast %53 : vector<8x256xf32> to vector<1x8x256xf32>
    tpu.vector_store %arg10[%c0_34, %c0_35, %c0_36], %56 {strides = array<i32>} : memref<1x8x256xf32, #tpu.memory_space<vmem>>, vector<1x8x256xf32>,
    return
  }
  func.func @transform_0(%arg0: i32) -> (i32, i32, i32) {
    %c0_i32 = arith.constant 0 : i32
    %c0_i32_0 = arith.constant 0 : i32
    %c0_i32_1 = arith.constant 0 : i32
    return %arg0, %c0_i32, %c0_i32_0 : i32, i32, i32
  }
  func.func @transform_1(%arg0: i32) -> (i32, i32, i32) {
    %c0_i32 = arith.constant 0 : i32
    %c0_i32_0 = arith.constant 0 : i32
    %c0_i32_1 = arith.constant 0 : i32
    return %arg0, %c0_i32, %c0_i32_0 : i32, i32, i32
  }
  func.func @transform_2(%arg0: i32) -> (i32, i32) {
    %c0_i32 = arith.constant 0 : i32
    %c0_i32_0 = arith.constant 0 : i32
    %c0_i32_1 = arith.constant 0 : i32
    return %c0_i32, %c0_i32_0 : i32, i32
  }
  func.func @transform_3(%arg0: i32) -> (i32, i32) {
    %c0_i32 = arith.constant 0 : i32
    %c0_i32_0 = arith.constant 0 : i32
    %c0_i32_1 = arith.constant 0 : i32
    return %c0_i32, %c0_i32_0 : i32, i32
  }
  func.func @transform_4(%arg0: i32) -> (i32, i32) {
    %c0_i32 = arith.constant 0 : i32
    %c0_i32_0 = arith.constant 0 : i32
    %c0_i32_1 = arith.constant 0 : i32
    return %c0_i32, %c0_i32_0 : i32, i32
  }
  func.func @transform_5(%arg0: i32) -> (i32, i32) {
    %c0_i32 = arith.constant 0 : i32
    %c0_i32_0 = arith.constant 0 : i32
    %c0_i32_1 = arith.constant 0 : i32
    return %c0_i32, %c0_i32_0 : i32, i32
  }
  func.func @transform_6(%arg0: i32) -> (i32, i32) {
    %c0_i32 = arith.constant 0 : i32
    %c0_i32_0 = arith.constant 0 : i32
    %c0_i32_1 = arith.constant 0 : i32
    return %c0_i32, %c0_i32_0 : i32, i32
  }
  func.func @transform_7(%arg0: i32) -> (i32, i32) {
    %c0_i32 = arith.constant 0 : i32
    %c0_i32_0 = arith.constant 0 : i32
    %c0_i32_1 = arith.constant 0 : i32
    return %c0_i32, %c0_i32_0 : i32, i32
  }
  func.func @transform_8(%arg0: i32) -> (i32, i32) {
    %c0_i32 = arith.constant 0 : i32
    %c0_i32_0 = arith.constant 0 : i32
    %c0_i32_1 = arith.constant 0 : i32
    return %c0_i32, %c0_i32_0 : i32, i32
  }
  func.func @transform_9(%arg0: i32) -> (i32, i32, i32) {
    %c0_i32 = arith.constant 0 : i32
    %c0_i32_0 = arith.constant 0 : i32
    %c0_i32_1 = arith.constant 0 : i32
    return %arg0, %c0_i32, %c0_i32_0 : i32, i32, i32
  }
}

</mosaic_0001>

<bundles_post_ra>
// kernel: local_network_forward.1
= control target key start
LH: loop header
LB: loop body
LE: loop exit
PB: predicated region body
PF: predicated region fallthrough
CT: control target
= control target key end

     0   :  { %s2273_s30 = smov 0   ;;  %s4285_s0 = inlined_call_operand.vmem [shape: f32[2,1,1024], index: 0, kind: input, shape index: {}]   ;;  %s4286_s1 = inlined_call_operand.vmem [shape: f32[2,8,256], index: 1, kind: input, shape index: {}]   ;;  %s4287_s2 = inlined_call_operand.vmem [shape: f32[20,1024], index: 2, kind: input, shape index: {}]   ;;  %s4288_s3 = inlined_call_operand.vmem [shape: f32[1,20], index: 3, kind: input, shape index: {}]   ;;  %s4289_s4 = inlined_call_operand.vmem [shape: f32[6,20], index: 4, kind: input, shape index: {}]   ;;  %s4290_s5 = inlined_call_operand.vmem [shape: f32[1,6], index: 5, kind: input, shape index: {}]   ;;  %s4291_s6 = inlined_call_operand.vmem [shape: f32[6,512], index: 6, kind: input, shape index: {}]   ;;  %s4292_s7 = inlined_call_operand.vmem [shape: f32[256,1], index: 7, kind: input, shape index: {}]   ;;  %s4293_s8 = inlined_call_operand.vmem [shape: f32[256,1], index: 8, kind: input, shape index: {}]   ;;  %s4294_s9 = inlined_call_operand.vmem [shape: f32[2,8,256], index: 9, kind: output, shape index: {}]  }
   0x1 LB: > { %s2075_s10 = sadd.s32 4294967295, %s2218_s30   ;;  %p2079_p0 = scmp.ge.s32.totalorder %s2218_s30, 1  ;;  %s2218_s30 = sphi %s2273_s30, %s19_s30  }
   0x2   : > { %p296_p1 = scmp.lt.s32.totalorder %s2218_s30, 3 }
   0x4   : > { %p297_p2 = pnand %p2079_p0, %p296_p1 }
   0x6   : > { %300 = sbr.rel (%p297_p2) target bundleno = 1201 (0x4b1), region = 56 }
   0xd   : > { %v352_v0 = vld [vmem:[%s4287_s2 + $0x8] sm:$0xff]  ;;  %v351_v2 = vld [vmem:[%s4287_s2] sm:$0xff]  ;;  %p336_p3 = scmp.lt.s32.totalorder %s2075_s10, 1  ;;  %v377_v3 = vlaneseq  ;;  %v354_v11 = vld [vmem:[%s4287_s2 + $0x18] sm:$0xff]  ;;  %vm700_vm0 = vcmask 162816   ;;  %v2220_v52 = vmov 0.0  }
   0xe   : > { %v360_v1 = vld [vmem:[%s4287_s2 + $0x48] sm:$0xff]  ;;  %v359_v5 = vld [vmem:[%s4287_s2 + $0x40] sm:$0xff]  ;;  %v362_v12 = vld [vmem:[%s4287_s2 + $0x58] sm:$0xff]  ;;  %vm2221_vm1 = vmmov 0   ;;  %v2222_v55 = vmov 0   ;;  %vm786_vm2 = vcmask 1045504  }
   0xf   : > { %v2108_v4 = vpack.c.bf16 %v360_v1, %v352_v0  ;;  %v2110_v6 = vpack.c.bf16 %v359_v5, %v351_v2  ;;  %v368_v7 = vld [vmem:[%s4287_s2 + $0x88] sm:$0xf]  ;;  %s5091_s10 = smov (!%p336_p3, %s2075_s10), 1  ;;  %v2298_v8 = vshrl.u32 %v377_v3, 7  ;;  %v367_v16 = vld [vmem:[%s4287_s2 + $0x80] sm:$0xf]  ;;  %v2112_v17 = vpack.c.bf16 %v362_v12, %v354_v11  ;;  %2207 = vset.pattern.permute.xlu1 %v2222_v55  ;;  %2206 = vset.pattern.permute.xlu0 %v2222_v55 }
  0x10   : > { %s2080_s21 = sshll.u32 %s5091_s10, 3  ;;  %v353_v18 = vld [vmem:[%s4287_s2 + $0x10] sm:$0xff]  ;;  %v370_v23 = vld [vmem:[%s4287_s2 + $0x98] sm:$0xf]  ;;  %v356_v24 = vld [vmem:[%s4287_s2 + $0x28] sm:$0xff]  ;;  %vm782_vm3 = vcmask 48128  }
  0x11   : > { %2109 = vmatprep.subr.bf16.mxu0 %v2108_v4  ;;  %v383_v9 = vsub.s32 1, %v2298_v8  ;;  %s339_s24 = scalar_lea.vmem %s4285_s0, %s2080_s21  ;;  %v2312_v14 = vsub.s32 0, %v2298_v8  ;;  %v391_v15 = vsub.s32 3, %v2298_v8  ;;  %v361_v19 = vld [vmem:[%s4287_s2 + $0x50] sm:$0xff]  ;;  %v364_v25 = vld [vmem:[%s4287_s2 + $0x68] sm:$0xff]  ;;  %v387_v26 = vsub.s32 2, %v2298_v8 }
  0x12   : > { %2111 = vmatpush1.bf16.xpose.msra.mxu0 %v2110_v6  ;;  %v350_v10 = vld [vmem:[%s339_s24] sm:$0xff]  ;;  %v2114_v21 = vpack.c.bf16 %v361_v19, %v353_v18  ;;  %v399_v27 = vsub.s32 5, %v2298_v8  ;;  %v369_v28 = vld [vmem:[%s4287_s2 + $0x90] sm:$0xf]  ;;  %v2116_v29 = vpack.c.bf16 %v364_v25, %v356_v24  ;;  %v372_v35 = vld [vmem:[%s4287_s2 + $0xa8] sm:$0xf] }
  0x13   : > { %421 = vmatprep.subr.mxu0 %v368_v7  ;;  %v384_v13 = vrot.slane %v350_v10, %v383_v9  ;;  %4424 = vst [vmem:[#allocation2_spill] sm:$0xff] %v2312_v14  ;;  %v380_v20 = vrot.slane %v350_v10, %v2312_v14  ;;  %v392_v22 = vrot.slane %v350_v10, %v391_v15  ;;  %v355_v30 = vld [vmem:[%s4287_s2 + $0x20] sm:$0xff]  ;;  %v358_v36 = vld [vmem:[%s4287_s2 + $0x38] sm:$0xff]  ;;  %v395_v38 = vsub.s32 4, %v2298_v8  ;;  %v357_v42 = vld [vmem:[%s4287_s2 + $0x30] sm:$0xff]  ;;  %s2099_s15 = sshll.u32 %s5091_s10, 4 }
  0x14   : > { %v363_v31 = vld [vmem:[%s4287_s2 + $0x60] sm:$0xff]  ;;  %v388_v32 = vrot.slane %v350_v10, %v387_v26  ;;  %v400_v34 = vrot.slane %v350_v10, %v399_v27  ;;  %v366_v37 = vld [vmem:[%s4287_s2 + $0x78] sm:$0xff]  ;;  %v407_v39 = vsub.s32 7, %v2298_v8  ;;  %v365_v43 = vld [vmem:[%s4287_s2 + $0x70] sm:$0xff]  ;;  %v403_v48 = vsub.s32 6, %v2298_v8  ;;  %s3612_s18 = scalar_lea.vmem %s4286_s1, %s2099_s15  ;;  %s349_s21 = scalar_lea.vmem %s4294_s9, %s2099_s15 }
  0x15   : > { %481 = vmatprep.mubr.f32.mxu0 %v384_v13  ;;  %v2118_v33 = vpack.c.bf16 %v363_v31, %v355_v30  ;;  %v371_v40 = vld [vmem:[%s4287_s2 + $0xa0] sm:$0xf]  ;;  %v2120_v41 = vpack.c.bf16 %v366_v37, %v358_v36  ;;  %v396_v44 = vrot.slane %v350_v10, %v395_v38  ;;  %v2122_v45 = vpack.c.bf16 %v365_v43, %v357_v42  ;;  %v374_v47 = vld [vmem:[%s4287_s2 + $0xb8] sm:$0xf]  ;;  %v373_v49 = vld [vmem:[%s4287_s2 + $0xb0] sm:$0xf] }
  0x16   : > { %v408_v46 = vrot.slane %v350_v10, %v407_v39  ;;  %v404_v50 = vrot.slane %v350_v10, %v403_v48  ;;  %v698_v51 = vld [vmem:[%s4289_s4] sm:$0x3f]  ;;  %v1414_v56 = vld [vmem:[%s4293_s8 + $0x8] sm:$0xff]  ;;  %v960_v58 = vld [vmem:[%s4292_s7 + $0x18] sm:$0xff] }
  0x17   : > { %v1413_v53 = vld [vmem:[%s4293_s8] sm:$0xff]  ;;  %v958_v57 = vld [vmem:[%s4292_s7 + $0x8] sm:$0xff]  ;;  %v959_v59 = vld [vmem:[%s4292_s7 + $0x10] sm:$0xff] }
  0x18   : > { %v957_v54 = vld [vmem:[%s4292_s7] sm:$0xff]  ;;  %1455 = vperm.xlu1 %2207, %v1413_v53   ;;  %v1416_v60 = vld [vmem:[%s4293_s8 + $0x18] sm:$0xff]  ;;  %v1415_v61 = vld [vmem:[%s4293_s8 + $0x10] sm:$0xff] }
  0x19   : > { %999 = vperm.xlu0 %2206, %v957_v54   ;;  %v962_v62 = vld [vmem:[%s4292_s7 + $0x28] sm:$0xff]  ;;  %v961_v63 = vld [vmem:[%s4292_s7 + $0x20] sm:$0xff]  ;;  %v964_v2 = vld [vmem:[%s4292_s7 + $0x38] sm:$0xff] }
  0x1a   : > { %422 = vmatpush1.xpose.msra.mxu0 %v367_v16  ;;  %v1418_v0 = vld [vmem:[%s4293_s8 + $0x28] sm:$0xff]  ;;  %v1417_v1 = vld [vmem:[%s4293_s8 + $0x20] sm:$0xff]  ;;  %v963_v3 = vld [vmem:[%s4292_s7 + $0x30] sm:$0xff] }
  0x1b   : > { %2113 = vmatprep.subr.bf16.mxu0 %v2112_v17  ;;  %v1420_v4 = vld [vmem:[%s4293_s8 + $0x38] sm:$0xff]  ;;  %v1419_v5 = vld [vmem:[%s4293_s8 + $0x30] sm:$0xff]  ;;  %v966_v6 = vld [vmem:[%s4292_s7 + $0x48] sm:$0xff] }
  0x1c   : > { %1460 = vperm.xlu1 %2207, %v1414_v56   ;;  %v965_v7 = vld [vmem:[%s4292_s7 + $0x40] sm:$0xff]  ;;  %v1422_v8 = vld [vmem:[%s4293_s8 + $0x48] sm:$0xff]  ;;  %v968_v10 = vld [vmem:[%s4292_s7 + $0x58] sm:$0xff] }
  0x1d   : > { %482 = vmatmul.mubr.f32.vlgmr.msra.gmra.mrb[0].mxu0 %v380_v20  ;;  %1004 = vperm.xlu0 %2206, %v958_v57   ;;  %v1421_v9 = vld [vmem:[%s4293_s8 + $0x40] sm:$0xff]  ;;  %v967_v11 = vld [vmem:[%s4292_s7 + $0x50] sm:$0xff]  ;;  %v1424_v12 = vld [vmem:[%s4293_s8 + $0x58] sm:$0xff] }
  0x1e   : > { %2115 = vmatpush1.bf16.xpose.msra.mxu0 %v2114_v21  ;;  %551 = vmatprep.mubr.f32.mxu0 %v392_v22  ;;  %v1423_v13 = vld [vmem:[%s4293_s8 + $0x50] sm:$0xff]  ;;  %v970_v15 = vld [vmem:[%s4292_s7 + $0x68] sm:$0xff]  ;;  %v969_v16 = vld [vmem:[%s4292_s7 + $0x60] sm:$0xff] }
  0x1f   : > { %491 = vmatprep.subr.mxu0 %v370_v23  ;;  %v1426_v17 = vld [vmem:[%s4293_s8 + $0x68] sm:$0xff]  ;;  %v1425_v18 = vld [vmem:[%s4293_s8 + $0x60] sm:$0xff]  ;;  %v972_v19 = vld [vmem:[%s4292_s7 + $0x78] sm:$0xff] }
  0x20   : > { %1014 = vperm.xlu1 %2207, %v960_v58   ;;  %v971_v20 = vld [vmem:[%s4292_s7 + $0x70] sm:$0xff]  ;;  %v1428_v21 = vld [vmem:[%s4293_s8 + $0x78] sm:$0xff]  ;;  %v974_v23 = vld [vmem:[%s4292_s7 + $0x88] sm:$0xff] }
  0x21   : > { %1009 = vperm.xlu0 %2206, %v959_v59   ;;  %v1427_v22 = vld [vmem:[%s4293_s8 + $0x70] sm:$0xff]  ;;  %v973_v24 = vld [vmem:[%s4292_s7 + $0x80] sm:$0xff]  ;;  %v1430_v25 = vld [vmem:[%s4293_s8 + $0x88] sm:$0xff] }
  0x22   : > { %v1429_v26 = vld [vmem:[%s4293_s8 + $0x80] sm:$0xff]  ;;  %v976_v27 = vld [vmem:[%s4292_s7 + $0x98] sm:$0xff]  ;;  %v978_v36 = vld [vmem:[%s4292_s7 + $0xa8] sm:$0xff] }
  0x23   : > { %v977_v37 = vld [vmem:[%s4292_s7 + $0xa0] sm:$0xff]  ;;  %v779_v38 = vld [vmem:[%s4291_s6 + $0x8] sm:$0x3f]  ;;  %v980_v42 = vld [vmem:[%s4292_s7 + $0xb8] sm:$0xff] }
  0x24   : > { %1470 = vperm.xlu1 %2207, %v1416_v60   ;;  %v778_v39 = vld [vmem:[%s4291_s6] sm:$0x3f]  ;;  %v979_v43 = vld [vmem:[%s4292_s7 + $0xb0] sm:$0xff]  ;;  %v1440_v54 = vld [vmem:[%s4293_s8 + $0xd8] sm:$0xff] }
  0x25   : > { %1465 = vperm.xlu0 %2206, %v1415_v61   ;;  %v981_v48 = vld [vmem:[%s4292_s7 + $0xc0] sm:$0xff]  ;;  %v983_v53 = vld [vmem:[%s4292_s7 + $0xd0] sm:$0xff]  ;;  %v986_v56 = vld [vmem:[%s4292_s7 + $0xe8] sm:$0xff] }
  0x26   : > { %492 = vmatpush1.xpose.msra.mxu0 %v369_v28  ;;  %v975_v28 = vld [vmem:[%s4292_s7 + $0x90] sm:$0xff]  ;;  %v985_v57 = vld [vmem:[%s4292_s7 + $0xe0] sm:$0xff]  ;;  %v1442_v58 = vld [vmem:[%s4293_s8 + $0xe8] sm:$0xff] }
  0x27   : > { %2117 = vmatprep.subr.bf16.mxu0 %v2116_v29  ;;  %v375_v29 = vld [vmem:[%s4288_s3] sm:$0x1]  ;;  %v1439_v55 = vld [vmem:[%s4293_s8 + $0xd0] sm:$0xff]  ;;  %v988_v60 = vld [vmem:[%s4292_s7 + $0xf8] sm:$0xff] }
  0x28   : > { %1024 = vperm.xlu1 %2207, %v962_v62   ;;  %v1441_v59 = vld [vmem:[%s4293_s8 + $0xe0] sm:$0xff]  ;;  %v987_v61 = vld [vmem:[%s4292_s7 + $0xf0] sm:$0xff]  ;;  %v1444_v62 = vld [vmem:[%s4293_s8 + $0xf8] sm:$0xff] }
  0x29   : > { %552 = vmatmul.mubr.f32.vlgmr.msra.gmra.mrb[0].mxu0 %v388_v32  ;;  %1019 = vperm.xlu0 %2206, %v961_v63   ;;  %v1443_v63 = vld [vmem:[%s4293_s8 + $0xf0] sm:$0xff] }
  0x2a   : > { %2119 = vmatpush1.bf16.xpose.msra.mxu0 %v2118_v33  ;;  %621 = vmatprep.mubr.f32.mxu0 %v400_v34  ;;  %v1432_v34 = vld [vmem:[%s4293_s8 + $0x98] sm:$0xff] }
  0x2b   : > { %561 = vmatprep.subr.mxu0 %v372_v35  ;;  %v1431_v35 = vld [vmem:[%s4293_s8 + $0x90] sm:$0xff] }
  0x2c   : > { %1480 = vperm.xlu1 %2207, %v1418_v0   ;;  %v699_v0 = vld [vmem:[%s4290_s5] sm:$0x1] }
  0x2d   : > { %1475 = vperm.xlu0 %2206, %v1417_v1  }
  0x30   : > { %1034 = vperm.xlu1 %2207, %v964_v2  }
  0x31   : > { %1029 = vperm.xlu0 %2206, %v963_v3  }
  0x32   : > { %562 = vmatpush1.xpose.msra.mxu0 %v371_v40  ;;  %v1434_v40 = vld [vmem:[%s4293_s8 + $0xa8] sm:$0xff] }
  0x33   : > { %2121 = vmatprep.subr.bf16.mxu0 %v2120_v41  ;;  %v1433_v41 = vld [vmem:[%s4293_s8 + $0xa0] sm:$0xff] }
  0x34   : > { %1490 = vperm.xlu1 %2207, %v1420_v4   ;;  %v780_v4 = vld [vmem:[%s4291_s6 + $0x10] sm:$0x3f] }
  0x35   : > { %622 = vmatmul.mubr.f32.vlgmr.msra.gmra.mrb[0].mxu0 %v396_v44  ;;  %1485 = vperm.xlu0 %2206, %v1419_v5   ;;  %v781_v44 = vld [vmem:[%s4291_s6 + $0x18] sm:$0x3f] }
  0x36   : > { %2123 = vmatpush1.bf16.xpose.msra.mxu0 %v2122_v45  ;;  %691 = vmatprep.mubr.f32.mxu0 %v408_v46  ;;  %v1436_v45 = vld [vmem:[%s4293_s8 + $0xb8] sm:$0xff]  ;;  %v1435_v46 = vld [vmem:[%s4293_s8 + $0xb0] sm:$0xff] }
  0x37   : > { %631 = vmatprep.subr.mxu0 %v374_v47  ;;  %v982_v47 = vld [vmem:[%s4292_s7 + $0xc8] sm:$0xff] }
  0x38   : > { %1044 = vperm.xlu1 %2207, %v966_v6  }
  0x39   : > { %1039 = vperm.xlu0 %2206, %v965_v7  }
  0x3c   : > { %1500 = vperm.xlu1 %2207, %v1422_v8  }
  0x3d   : > { %1495 = vperm.xlu0 %2206, %v1421_v9  }
  0x3e   : > { %632 = vmatpush1.xpose.msra.mxu0 %v373_v49  ;;  %v1438_v49 = vld [vmem:[%s4293_s8 + $0xc8] sm:$0xff] }
  0x3f   : > { %2103 = vmatprep.subr.mxu0 %v2220_v52 }
  0x40   : > { %1054 = vperm.xlu1 %2207, %v968_v10  }
  0x41   : > { %692 = vmatmul.mubr.f32.vlgmr.msra.gmra.mrb[0].mxu0 %v404_v50  ;;  %1049 = vperm.xlu0 %2206, %v967_v11   ;;  %v1437_v50 = vld [vmem:[%s4293_s8 + $0xc0] sm:$0xff] }
  0x42   : > { %2105 = vmatprep.mubr.msk.f32.mxu0 %vm2221_vm1, %v2220_v52  ;;  %2104 = vmatpush3.xpose.msk.msra.mxu0 %vm700_vm0, %v698_v51  ;;  %v984_v51 = vld [vmem:[%s4292_s7 + $0xd8] sm:$0xff] }
  0x43   : > { %2087 = vmatprep.subr.msk.mxu0 %vm786_vm2, %v779_v38 }
  0x44   : > { %1510 = vperm.xlu1 %2207, %v1424_v12  }
  0x45   : > { %1505 = vperm.xlu0 %2206, %v1423_v13  }
  0x48   : > { %1064 = vperm.xlu1 %2207, %v970_v15  }
  0x49   : > { %1059 = vperm.xlu0 %2206, %v969_v16  }
  0x4c   : > { %1520 = vperm.xlu1 %2207, %v1426_v17  }
  0x4d   : > { %1515 = vperm.xlu0 %2206, %v1425_v18  }
  0x50   : > { %1074 = vperm.xlu1 %2207, %v972_v19  }
  0x51   : > { %1069 = vperm.xlu0 %2206, %v971_v20  }
  0x54   : > { %1530 = vperm.xlu1 %2207, %v1428_v21  }
  0x55   : > { %1525 = vperm.xlu0 %2206, %v1427_v22  }
  0x58   : > { %1084 = vperm.xlu1 %2207, %v974_v23  }
  0x59   : > { %1079 = vperm.xlu0 %2206, %v973_v24  }
  0x5c   : > { %1540 = vperm.xlu1 %2207, %v1430_v25  }
  0x5d   : > { %1535 = vperm.xlu0 %2206, %v1429_v26  }
  0x60   : > { %1094 = vperm.xlu1 %2207, %v976_v27  }
  0x61   : > { %1089 = vperm.xlu0 %2206, %v975_v28  }
  0x64   : > { %1550 = vperm.xlu1 %2207, %v1432_v34  }
  0x65   : > { %1545 = vperm.xlu0 %2206, %v1431_v35  }
  0x68   : > { %1104 = vperm.xlu1 %2207, %v978_v36  }
  0x69   : > { %1099 = vperm.xlu0 %2206, %v977_v37  }
  0x6c   : > { %1560 = vperm.xlu1 %2207, %v1434_v40  }
  0x6d   : > { %1555 = vperm.xlu0 %2206, %v1433_v41  }
  0x70   : > { %1114 = vperm.xlu1 %2207, %v980_v42  }
  0x71   : > { %1109 = vperm.xlu0 %2206, %v979_v43  }
  0x74   : > { %1570 = vperm.xlu1 %2207, %v1436_v45  }
  0x75   : > { %1565 = vperm.xlu0 %2206, %v1435_v46  }
  0x78   : > { %1124 = vperm.xlu1 %2207, %v982_v47  }
  0x79   : > { %1119 = vperm.xlu0 %2206, %v981_v48  }
  0x7c   : > { %1580 = vperm.xlu1 %2207, %v1438_v49  }
  0x7d   : > { %1575 = vperm.xlu0 %2206, %v1437_v50  }
  0x80   : > { %1134 = vperm.xlu1 %2207, %v984_v51  }
  0x81   : > { %1129 = vperm.xlu0 %2206, %v983_v53  }
  0x84   : > { %1590 = vperm.xlu1 %2207, %v1440_v54  }
  0x85   : > { %1585 = vperm.xlu0 %2206, %v1439_v55  }
  0x88   : > { %1144 = vperm.xlu1 %2207, %v986_v56  }
  0x89   : > { %1139 = vperm.xlu0 %2206, %v985_v57  }
  0x8c   : > { %1600 = vperm.xlu1 %2207, %v1442_v58  }
  0x8d   : > { %1595 = vperm.xlu0 %2206, %v1441_v59  }
  0x90   : > { %1154 = vperm.xlu1 %2207, %v988_v60  }
  0x91   : > { %1149 = vperm.xlu0 %2206, %v987_v61  }
  0x94   : > { %1610 = vperm.xlu1 %2207, %v1444_v62  }
  0x95   : > { %1605 = vperm.xlu0 %2206, %v1443_v63  }
  0x97   : > { %v2597_v7 = vpop.permute.xlu1 %1455 }
  0x98   : > { %v2595_v6 = vpop.permute.xlu0 %999  ;;  %4425 = vst [vmem:[#allocation3_spill] sm:$0xff] %v2597_v7 }
  0x9b   : > { %v2601_v9 = vpop.permute.xlu1 %1460 }
  0x9c   : > { %v2599_v8 = vpop.permute.xlu0 %1004  ;;  %4426 = vst [vmem:[#allocation4_spill] sm:$0xff] %v2601_v9 }
  0x9f   : > { %v2605_v11 = vpop.permute.xlu1 %1014 }
  0xa0   : > { %v2603_v10 = vpop.permute.xlu0 %1009 }
  0xa3   : > { %v2609_v13 = vpop.permute.xlu1 %1470 }
  0xa4   : > { %v2607_v12 = vpop.permute.xlu0 %1465  ;;  %4428 = vst [vmem:[#allocation6_spill] sm:$0xff] %v2609_v13 }
  0xa5   : > { %4427 = vst [vmem:[#allocation5_spill] sm:$0xff] %v2607_v12 }
  0xa8   : > { %v2611_v15 = vpop.permute.xlu0 %1019 }
  0xac   : > { %v2615_v16 = vpop.permute.xlu0 %1475 }
  0xad   : > { %4429 = vst [vmem:[#allocation7_spill] sm:$0xff] %v2615_v16 }
  0xb0   : > { %v2619_v18 = vpop.permute.xlu0 %1029 }
  0xb4   : > { %v2623_v20 = vpop.permute.xlu0 %1485 }
  0xb5   : > { %4431 = vst [vmem:[#allocation9_spill] sm:$0xff] %v2623_v20 }
  0xb8   : > { %v2627_v22 = vpop.permute.xlu0 %1039 }
  0xbc   : > { %v2631_v24 = vpop.permute.xlu0 %1495 }
  0xbd   : > { %4433 = vst [vmem:[#allocation11_spill] sm:$0xff] %v2631_v24 }
  0xc0   : > { %v2635_v26 = vpop.permute.xlu0 %1049 }
  0xc4   : > { %v2639_v28 = vpop.permute.xlu0 %1505 }
  0xc5   : > { %4435 = vst [vmem:[#allocation13_spill] sm:$0xff] %v2639_v28 }
 0x114   : > { %v693_v30 = vpop.f32.mrb[0].mxu0 }
 0x115   : > { %v2188_v31 = vadd.f32 %v693_v30, %v375_v29  ;;  %v695_v32 = vpop.f32.mrb[1].mxu0  ;;  %v2643_v30 = vpop.permute.xlu0 %1059 }
 0x116   : > { %4437 = vst [vmem:[#allocation15_spill] sm:$0xff] %v2643_v30 }
 0x117   : > { %2208 = vtanh.f32 %v2188_v31 }
 0x119   : > { %v2647_v32 = vpop.permute.xlu0 %1515 }
 0x11a   : > { %4438 = vst [vmem:[#allocation16_spill] sm:$0xff] %v2647_v32 }
 0x11d   : > { %v2651_v34 = vpop.permute.xlu0 %1069 }
 0x121   : > { %v2209_v33 = vpop.eup %2208  ;;  %v2655_v36 = vpop.permute.xlu0 %1525 }
 0x122   : > { %2106 = vmatmul.mubr.msk.f32.vlgmr.msra.gmra.mrb[2].mxu0 %vm700_vm0, %v2209_v33  ;;  %4441 = vst [vmem:[#allocation19_spill] sm:$0xff] %v2655_v36 }
 0x123   : > { %863 = vmatprep.mubr.f32.mxu0 %v2220_v52  ;;  %2088 = vmatpush1.msk.msra.mxu0 %vm786_vm2, %v778_v39 }
 0x124   : > { %2090 = vmatprep.subr.msk.mxu0 %vm786_vm2, %v781_v44 }
 0x125   : > { %v2659_v38 = vpop.permute.xlu0 %1079 }
 0x129   : > { %v2663_v40 = vpop.permute.xlu0 %1535 }
 0x12a   : > { %4443 = vst [vmem:[#allocation21_spill] sm:$0xff] %v2663_v40 }
 0x12d   : > { %v2667_v42 = vpop.permute.xlu0 %1089 }
 0x12e   : > { %4445 = vst [vmem:[#allocation23_spill] sm:$0xff] %v2667_v42 }
 0x131   : > { %v2671_v44 = vpop.permute.xlu0 %1545 }
 0x132   : > { %4446 = vst [vmem:[#allocation24_spill] sm:$0xff] %v2671_v44 }
 0x135   : > { %v2675_v46 = vpop.permute.xlu0 %1099 }
 0x139   : > { %v2679_v48 = vpop.permute.xlu0 %1555 }
 0x13a   : > { %4448 = vst [vmem:[#allocation26_spill] sm:$0xff] %v2679_v48 }
 0x13d   : > { %v2683_v50 = vpop.permute.xlu0 %1109 }
 0x141   : > { %v2687_v53 = vpop.permute.xlu0 %1565 }
 0x142   : > { %4450 = vst [vmem:[#allocation28_spill] sm:$0xff] %v2687_v53 }
 0x145   : > { %v2691_v55 = vpop.permute.xlu0 %1119 }
 0x146   : > { %4452 = vst [vmem:[#allocation30_spill] sm:$0xff] %v2691_v55 }
 0x149   : > { %v2695_v57 = vpop.permute.xlu0 %1575 }
 0x14a   : > { %4454 = vst [vmem:[#allocation32_spill] sm:$0xff] %v2695_v57 }
 0x14d   : > { %v2699_v59 = vpop.permute.xlu0 %1129 }
 0x14e   : > { %4456 = vst [vmem:[#allocation34_spill] sm:$0xff] %v2699_v59 }
 0x1f5   : > { %v773_v1 = vpop.f32.mrb[2].mxu0 }
 0x1f6   : > { %v774_v2 = vadd.f32 %v773_v1, %v699_v0  ;;  %v2107_v3 = vpop.f32.mrb[3].mxu0 }
 0x1f8   : > { %2210 = vtanh.f32 %v774_v2 }
 0x202   : > { %v2211_v5 = vpop.eup %2210 }
 0x203   : > { %2089 = vmatmul.mubr.msk.f32.vlgmr.msra.gmra.mrb[4].mxu0 %vm782_vm3, %v2211_v5 }
 0x204   : > { %2091 = vmatpush1.msk.msra.mxu0 %vm786_vm2, %v780_v4  ;;  %934 = vmatprep.mubr.f32.mxu0 %v2220_v52  ;;  %v2613_v52 = vpop.permute.xlu1 %1024 }
 0x207   : > { %2092 = vmatmul.mubr.msk.f32.vlgmr.msra.gmra.mrb[6].mxu0 %vm782_vm3, %v2211_v5 }
 0x208   : > { %v2617_v17 = vpop.permute.xlu1 %1480 }
 0x209   : > { %4430 = vst [vmem:[#allocation8_spill] sm:$0xff] %v2617_v17 }
 0x20c   : > { %v2621_v19 = vpop.permute.xlu1 %1034 }
 0x210   : > { %v2625_v21 = vpop.permute.xlu1 %1490 }
 0x211   : > { %4432 = vst [vmem:[#allocation10_spill] sm:$0xff] %v2625_v21 }
 0x214   : > { %v2629_v23 = vpop.permute.xlu1 %1044 }
 0x218   : > { %v2633_v25 = vpop.permute.xlu1 %1500 }
 0x219   : > { %4434 = vst [vmem:[#allocation12_spill] sm:$0xff] %v2633_v25 }
 0x21c   : > { %v2637_v27 = vpop.permute.xlu1 %1054 }
 0x220   : > { %v2641_v29 = vpop.permute.xlu1 %1510 }
 0x221   : > { %4436 = vst [vmem:[#allocation14_spill] sm:$0xff] %v2641_v29 }
 0x224   : > { %v2645_v31 = vpop.permute.xlu1 %1064 }
 0x228   : > { %v2649_v33 = vpop.permute.xlu1 %1520 }
 0x229   : > { %4439 = vst [vmem:[#allocation17_spill] sm:$0xff] %v2649_v33 }
 0x22c   : > { %v2653_v35 = vpop.permute.xlu1 %1074 }
 0x22d   : > { %4440 = vst [vmem:[#allocation18_spill] sm:$0xff] %v2653_v35 }
 0x230   : > { %v2657_v37 = vpop.permute.xlu1 %1530 }
 0x231   : > { %4442 = vst [vmem:[#allocation20_spill] sm:$0xff] %v2657_v37 }
 0x234   : > { %v2661_v39 = vpop.permute.xlu1 %1084 }
 0x238   : > { %v2665_v41 = vpop.permute.xlu1 %1540 }
 0x239   : > { %4444 = vst [vmem:[#allocation22_spill] sm:$0xff] %v2665_v41 }
 0x23c   : > { %v2669_v43 = vpop.permute.xlu1 %1094 }
 0x240   : > { %v2673_v45 = vpop.permute.xlu1 %1550 }
 0x241   : > { %4447 = vst [vmem:[#allocation25_spill] sm:$0xff] %v2673_v45 }
 0x244   : > { %v2677_v47 = vpop.permute.xlu1 %1104 }
 0x248   : > { %v2681_v49 = vpop.permute.xlu1 %1560 }
 0x249   : > { %4449 = vst [vmem:[#allocation27_spill] sm:$0xff] %v2681_v49 }
 0x24c   : > { %v2685_v51 = vpop.permute.xlu1 %1114 }
 0x250   : > { %v2689_v54 = vpop.permute.xlu1 %1570 }
 0x251   : > { %4451 = vst [vmem:[#allocation29_spill] sm:$0xff] %v2689_v54  ;;  %v2703_v54 = vpop.permute.xlu0 %1585 }
 0x252   : > { %4458 = vst [vmem:[#allocation36_spill] sm:$0xff] %v2703_v54 }
 0x254   : > { %v2693_v56 = vpop.permute.xlu1 %1124 }
 0x255   : > { %4453 = vst [vmem:[#allocation31_spill] sm:$0xff] %v2693_v56 }
 0x258   : > { %v2697_v58 = vpop.permute.xlu1 %1580 }
 0x259   : > { %4455 = vst [vmem:[#allocation33_spill] sm:$0xff] %v2697_v58 }
 0x25c   : > { %v2701_v61 = vpop.permute.xlu1 %1134 }
 0x25d   : > { %4457 = vst [vmem:[#allocation35_spill] sm:$0xff] %v2701_v61 }
 0x260   : > { %v2705_v53 = vpop.permute.xlu1 %1590 }
 0x261   : > { %4459 = vst [vmem:[#allocation37_spill] sm:$0xff] %v2705_v53 }
 0x2d6   : > { %v865_v60 = vpop.f32.mrb[4].mxu0 }
 0x2d7   : > { %v941_v62 = vadd.f32 1.0, %v865_v60  ;;  %v867_v63 = vpop.f32.mrb[5].mxu0 }
 0x2d8   : > { %v942_v0 = vadd.f32 1.0, %v867_v63 }
 0x2d9   : > { %v943_v1 = vmul.f32 16.0, %v941_v62  ;;  %v2712_v62 = vpop.permute.xlu0 %1139 }
 0x2da   : > { %v944_v2 = vmul.f32 16.0, %v942_v0  ;;  %v936_v3 = vpop.f32.mrb[6].mxu0  ;;  %4460 = vst [vmem:[#allocation38_spill] sm:$0xff] %v2712_v62  ;;  %v2714_v0 = vpop.permute.xlu1 %1144 }
 0x2db   : > { %v2093_v4 = vadd.f32 -1.0, %v943_v1  ;;  %v938_v5 = vpop.f32.mrb[7].mxu0  ;;  %v949_v48 = vadd.f32 1.0, %v936_v3  ;;  %4461 = vst [vmem:[#allocation39_spill] sm:$0xff] %v2714_v0 }
 0x2dc   : > { %v2094_v49 = vadd.f32 -1.0, %v944_v2  ;;  %v950_v45 = vadd.f32 1.0, %v938_v5 }
 0x2dd   : > { %v947_v57 = vmul.f32 0.5, %v2093_v4  ;;  %v951_v1 = vmul.f32 16.0, %v949_v48  ;;  %v2721_v2 = vpop.permute.xlu0 %1595 }
 0x2de   : > { %v948_v63 = vmul.f32 0.5, %v2094_v49  ;;  %v952_v44 = vmul.f32 16.0, %v950_v45  ;;  %4463 = vst [vmem:[#allocation41_spill] sm:$0xff] %v2721_v2  ;;  %v2731_v48 = vpop.permute.xlu1 %1600 }
 0x2df   : > { %v2708_v58 = vrot.slane %v947_v57, %v2312_v14  ;;  %v2719_v4 = vadd.f32 -1.0, %v951_v1  ;;  %4465 = vst [vmem:[#allocation43_spill] sm:$0xff] %v2731_v48 }
 0x2e0   : > { %v2717_v54 = vrot.slane %v948_v63, %v2312_v14  ;;  %v2729_v5 = vadd.f32 -1.0, %v952_v44 }
 0x2e1   : > { %4462 = vst [vmem:[#allocation40_spill] sm:$0xff] %v2719_v4  ;;  %v1159_v57 = vsub.f32 %v2708_v58, %v2599_v8  ;;  %v1161_v3 = vsub.f32 %v2708_v58, %v2603_v10  ;;  %v1163_v49 = vsub.f32 %v2708_v58, %v2605_v11  ;;  %v1165_v45 = vsub.f32 %v2708_v58, %v2611_v15  ;;  %v2773_v21 = vpop.permute.xlu0 %1149 }
 0x2e2   : > { %4464 = vst [vmem:[#allocation42_spill] sm:$0xff] %v2729_v5  ;;  %v1167_v63 = vsub.f32 %v2708_v58, %v2613_v52  ;;  %v1169_v1 = vsub.f32 %v2708_v58, %v2619_v18  ;;  %v1171_v2 = vsub.f32 %v2708_v58, %v2621_v19  ;;  %v1173_v44 = vsub.f32 %v2708_v58, %v2627_v22  ;;  %v2783_v12 = vpop.permute.xlu1 %1154 }
 0x2e3   : > { %v1175_v48 = vsub.f32 %v2708_v58, %v2629_v23  ;;  %v1177_v53 = vsub.f32 %v2708_v58, %v2635_v26  ;;  %v1179_v5 = vsub.f32 %v2708_v58, %v2637_v27  ;;  %v1181_v41 = vsub.f32 %v2708_v58, %v2643_v30  ;;  %4466 = vst [vmem:[#allocation44_spill] sm:$0xff] %v2773_v21 }
 0x2e4   : > { %v1183_v60 = vsub.f32 %v2708_v58, %v2645_v31  ;;  %v1185_v40 = vsub.f32 %v2708_v58, %v2651_v34  ;;  %v1187_v37 = vsub.f32 %v2708_v58, %v2653_v35  ;;  %v1189_v36 = vsub.f32 %v2708_v58, %v2659_v38  ;;  %4467 = vst [vmem:[#allocation45_spill] sm:$0xff] %v2783_v12 }
 0x2e5   : > { %v1191_v33 = vsub.f32 %v2708_v58, %v2661_v39  ;;  %v1193_v32 = vsub.f32 %v2708_v58, %v2667_v42  ;;  %v1195_v29 = vsub.f32 %v2708_v58, %v2669_v43  ;;  %v1197_v28 = vsub.f32 %v2708_v58, %v2675_v46 }
 0x2e6   : > { %v1199_v25 = vsub.f32 %v2708_v58, %v2677_v47  ;;  %v1201_v24 = vsub.f32 %v2708_v58, %v2683_v50  ;;  %v1203_v20 = vsub.f32 %v2708_v58, %v2685_v51  ;;  %v1205_v17 = vsub.f32 %v2708_v58, %v2691_v55 }
 0x2e7   : > { %v1207_v16 = vsub.f32 %v2708_v58, %v2693_v56  ;;  %v1209_v13 = vsub.f32 %v2708_v58, %v2699_v59  ;;  %v1211_v9 = vsub.f32 %v2708_v58, %v2701_v61  ;;  %v1213_v7 = vsub.f32 %v2708_v58, %v2712_v62 }
 0x2e8   : > { %v1215_v14 = vsub.f32 %v2708_v58, %v2714_v0  ;;  %v1217_v4 = vsub.f32 %v2708_v58, %v2773_v21  ;;  %v1219_v56 = vsub.f32 %v2708_v58, %v2783_v12  ;;  %v4468_v0 = vsub.f32 %v2708_v58, %v2595_v6 }
 0x2e9   : > { %v2838_v21 = vand.u32 2147483647, %v1159_v57  ;;  %v2840_v59 = vand.u32 2147483647, %v1161_v3  ;;  %v2842_v35 = vand.u32 2147483647, %v1163_v49  ;;  %v1202_v49 = vsub.f32 %v2717_v54, %v2683_v50 }
 0x2ea   : > { %v2834_v30 = vand.u32 2147483647, %v4468_v0  ;;  %v2846_v55 = vand.u32 2147483647, %v1165_v45  ;;  %v2848_v62 = vand.u32 2147483647, %v1167_v63 }
 0x2eb   : > { %v2850_v42 = vand.u32 2147483647, %v1169_v1  ;;  %v2854_v0 = vand.u32 2147483647, %v1171_v2  ;;  %v2856_v57 = vand.u32 2147483647, %v1173_v44  ;;  %v1204_v1 = vsub.f32 %v2717_v54, %v2685_v51 }
 0x2ec   : > { %4469 = vst [vmem:[#allocation46_spill] sm:$0xff] %v2834_v30  ;;  %4470 = vst [vmem:[#allocation47_spill] sm:$0xff] %v2846_v55  ;;  %v2858_v3 = vand.u32 2147483647, %v1175_v48  ;;  %v2862_v12 = vand.u32 2147483647, %v1177_v53 }
 0x2ed   : > { %4471 = vst [vmem:[#allocation48_spill] sm:$0xff] %v2856_v57  ;;  %v2864_v45 = vand.u32 2147483647, %v1179_v5  ;;  %v2866_v63 = vand.u32 2147483647, %v1181_v41  ;;  %v4476_v48 = vld [vmem:[#allocation30_spill] sm:$0xff] }
 0x2ee   : > { %4472 = vst [vmem:[#allocation49_spill] sm:$0xff] %v2858_v3  ;;  %v2870_v61 = vand.u32 2147483647, %v1183_v60  ;;  %v2872_v2 = vand.u32 2147483647, %v1185_v40  ;;  %v1206_v58 = vsub.f32 %v2717_v54, %v4476_v48  ;;  %v4477_v41 = vld [vmem:[#allocation31_spill] sm:$0xff] }
 0x2ef   : > { %4473 = vst [vmem:[#allocation50_spill] sm:$0xff] %v2866_v63  ;;  %v2874_v44 = vand.u32 2147483647, %v1187_v37  ;;  %v2878_v3 = vand.u32 2147483647, %v1189_v36  ;;  %v1208_v5 = vsub.f32 %v2717_v54, %v4477_v41  ;;  %v4480_v40 = vld [vmem:[#allocation40_spill] sm:$0xff] }
 0x2f0   : > { %4474 = vst [vmem:[#allocation51_spill] sm:$0xff] %v2872_v2  ;;  %v2880_v50 = vand.u32 2147483647, %v1191_v33  ;;  %v2882_v53 = vand.u32 2147483647, %v1193_v32  ;;  %v955_v60 = vmul.f32 0.5, %v4480_v40 }
 0x2f1   : > { %4475 = vst [vmem:[#allocation52_spill] sm:$0xff] %v2874_v44  ;;  %v2886_v63 = vand.u32 2147483647, %v1195_v29  ;;  %v2888_v51 = vand.u32 2147483647, %v1197_v28  ;;  %v4481_v37 = vld [vmem:[#allocation34_spill] sm:$0xff] }
 0x2f2   : > { %v1210_v44 = vsub.f32 %v2717_v54, %v4481_v37  ;;  %v2893_v2 = vand.u32 2147483647, %v1199_v25  ;;  %v2895_v36 = vand.u32 2147483647, %v1201_v24  ;;  %v2897_v33 = vand.u32 2147483647, %v1203_v20 }
 0x2f3   : > { %4478 = vst [vmem:[#allocation30_spill] sm:$0xff] %v2886_v63  ;;  %4479 = vst [vmem:[#allocation31_spill] sm:$0xff] %v2888_v51  ;;  %v2899_v32 = vand.u32 2147483647, %v1205_v17  ;;  %v2901_v48 = vand.u32 2147483647, %v1207_v16 }
 0x2f4   : > { %4482 = vst [vmem:[#allocation40_spill] sm:$0xff] %v2893_v2  ;;  %v2903_v41 = vand.u32 2147483647, %v1209_v13  ;;  %v4484_v29 = vld [vmem:[#allocation2_spill] sm:$0xff]  ;;  %v4485_v51 = vld [vmem:[#allocation35_spill] sm:$0xff] }
 0x2f5   : > { %4483 = vst [vmem:[#allocation34_spill] sm:$0xff] %v2899_v32  ;;  %v2906_v28 = vrot.slane %v955_v60, %v4484_v29  ;;  %v1212_v40 = vsub.f32 %v2717_v54, %v4485_v51  ;;  %v2910_v63 = vand.u32 2147483647, %v1211_v9  ;;  %v2912_v25 = vand.u32 2147483647, %v1213_v7  ;;  %v4490_v60 = vld [vmem:[#allocation38_spill] sm:$0xff] }
 0x2f6   : > { %v2914_v24 = vand.u32 2147483647, %v1215_v14  ;;  %v2916_v20 = vand.u32 2147483647, %v1217_v4  ;;  %v2918_v17 = vand.u32 2147483647, %v1219_v56  ;;  %v1214_v29 = vsub.f32 %v2717_v54, %v4490_v60 }
 0x2f7   : > { %4486 = vst [vmem:[#allocation35_spill] sm:$0xff] %v2910_v63  ;;  %v4491_v9 = vsub.f32 %v2717_v54, %v2595_v6  ;;  %v4492_v14 = vsub.f32 %v2717_v54, %v2599_v8  ;;  %v4494_v56 = vsub.f32 %v2717_v54, %v2603_v10  ;;  %v4496_v16 = vld [vmem:[#allocation39_spill] sm:$0xff]  ;;  %v4497_v60 = vsub.f32 %v2717_v54, %v2605_v11  ;;  %v4501_v10 = vld [vmem:[#allocation44_spill] sm:$0xff]  ;;  %v4562_v32 = vld [vmem:[#allocation42_spill] sm:$0xff] }
 0x2f8   : > { %4487 = vst [vmem:[#allocation53_spill] sm:$0xff] %v2916_v20  ;;  %4488 = vst [vmem:[#allocation54_spill] sm:$0xff] %v2918_v17  ;;  %v1216_v37 = vsub.f32 %v2717_v54, %v4496_v16  ;;  %v4498_v6 = vsub.f32 %v2717_v54, %v2611_v15  ;;  %v4499_v8 = vsub.f32 %v2717_v54, %v2613_v52  ;;  %v4506_v52 = vld [vmem:[#allocation45_spill] sm:$0xff]  ;;  %v4541_v55 = vld [vmem:[#allocation52_spill] sm:$0xff] }
 0x2f9   : > { %v2928_v51 = vand.u32 2147483647, %v4491_v9  ;;  %v2933_v7 = vand.u32 2147483647, %v4492_v14  ;;  %v2938_v4 = vand.u32 2147483647, %v4494_v56  ;;  %v1218_v56 = vsub.f32 %v2717_v54, %v4501_v10 }
 0x2fa   : > { %v2945_v13 = vand.u32 2147483647, %v4497_v60  ;;  %v2950_v9 = vand.u32 2147483647, %v4498_v6  ;;  %v2955_v14 = vand.u32 2147483647, %v4499_v8  ;;  %v4502_v16 = vsub.f32 %v2717_v54, %v2619_v18 }
 0x2fb   : > { %4493 = vst [vmem:[#allocation38_spill] sm:$0xff] %v2933_v7  ;;  %4495 = vst [vmem:[#allocation55_spill] sm:$0xff] %v2938_v4  ;;  %v4503_v11 = vsub.f32 %v2717_v54, %v2621_v19  ;;  %v4504_v15 = vsub.f32 %v2717_v54, %v2627_v22  ;;  %v1220_v8 = vsub.f32 %v2717_v54, %v4506_v52  ;;  %v4513_v22 = vld [vmem:[#allocation15_spill] sm:$0xff]  ;;  %v4542_v57 = vld [vmem:[#allocation30_spill] sm:$0xff] }
 0x2fc   : > { %4500 = vst [vmem:[#allocation39_spill] sm:$0xff] %v2955_v14  ;;  %v2962_v30 = vand.u32 2147483647, %v4502_v16  ;;  %v4507_v10 = vsub.f32 %v2717_v54, %v2629_v23  ;;  %v4509_v18 = vsub.f32 %v2717_v54, %v2635_v26  ;;  %v4511_v19 = vsub.f32 %v2717_v54, %v2637_v27  ;;  %v4524_v27 = vld [vmem:[#allocation23_spill] sm:$0xff]  ;;  %v4596_v4 = vld [vmem:[#allocation48_spill] sm:$0xff] }
 0x2fd   : > { %v2967_v60 = vand.u32 2147483647, %v4503_v11  ;;  %v2972_v6 = vand.u32 2147483647, %v4504_v15  ;;  %v4514_v15 = vsub.f32 %v2717_v54, %v4513_v22  ;;  %v4515_v23 = vsub.f32 %v2717_v54, %v2645_v31 }
 0x2fe   : > { %v2979_v14 = vand.u32 2147483647, %v4507_v10  ;;  %v2984_v16 = vand.u32 2147483647, %v4509_v18  ;;  %v2989_v11 = vand.u32 2147483647, %v4511_v19  ;;  %v4516_v26 = vsub.f32 %v2717_v54, %v2651_v34 }
 0x2ff   : > { %4505 = vst [vmem:[#allocation44_spill] sm:$0xff] %v2972_v6  ;;  %v2994_v6 = vand.u32 2147483647, %v4514_v15  ;;  %v2999_v52 = vand.u32 2147483647, %v4515_v23  ;;  %v4519_v19 = vld [vmem:[#allocation18_spill] sm:$0xff]  ;;  %v4521_v22 = vsub.f32 %v2717_v54, %v2659_v38  ;;  %v4522_v31 = vsub.f32 %v2717_v54, %v2661_v39 }
 0x300   : > { %4508 = vst [vmem:[#allocation45_spill] sm:$0xff] %v2979_v14  ;;  %4510 = vst [vmem:[#allocation56_spill] sm:$0xff] %v2984_v16  ;;  %v3004_v10 = vand.u32 2147483647, %v4516_v26  ;;  %v4525_v18 = vsub.f32 %v2717_v54, %v4524_v27  ;;  %v4528_v38 = vsub.f32 %v2717_v54, %v2675_v46  ;;  %v4531_v26 = vsub.f32 %v2717_v54, %v2677_v47 }
 0x301   : > { %4512 = vst [vmem:[#allocation57_spill] sm:$0xff] %v2989_v11  ;;  %v4520_v11 = vsub.f32 %v2717_v54, %v4519_v19  ;;  %v3016_v15 = vand.u32 2147483647, %v4521_v22  ;;  %v3021_v23 = vand.u32 2147483647, %v4522_v31 }
 0x302   : > { %4517 = vst [vmem:[#allocation15_spill] sm:$0xff] %v3004_v10  ;;  %v3028_v10 = vand.u32 2147483647, %v4525_v18  ;;  %v3038_v22 = vand.u32 2147483647, %v4528_v38 }
 0x303   : > { %v3011_v16 = vand.u32 2147483647, %v4520_v11  ;;  %v4526_v11 = vsub.f32 %v2717_v54, %v2669_v43  ;;  %v3045_v34 = vand.u32 2147483647, %v4531_v26  ;;  %v3047_v18 = vand.u32 2147483647, %v1202_v49 }
 0x304   : > { %4529 = vst [vmem:[#allocation23_spill] sm:$0xff] %v3038_v22  ;;  %v3049_v27 = vand.u32 2147483647, %v1204_v1  ;;  %v3055_v46 = vand.u32 2147483647, %v1208_v5  ;;  %v4539_v22 = vld [vmem:[#allocation50_spill] sm:$0xff] }
 0x305   : > { %v3033_v19 = vand.u32 2147483647, %v4526_v11  ;;  %4532 = vst [vmem:[#allocation58_spill] sm:$0xff] %v3045_v34  ;;  %4533 = vst [vmem:[#allocation59_spill] sm:$0xff] %v3047_v18  ;;  %v3057_v38 = vand.u32 2147483647, %v1210_v44 }
 0x306   : > { %v3061_v39 = vand.u32 2147483647, %v1212_v40  ;;  %v3063_v47 = vand.u32 2147483647, %v1214_v29  ;;  %v3065_v54 = vand.u32 2147483647, %v1216_v37  ;;  %v3141_v37 = vpop.permute.xlu1 %1610 }
 0x307   : > { %4527 = vst [vmem:[#allocation18_spill] sm:$0xff] %v3033_v19  ;;  %v3053_v19 = vand.u32 2147483647, %v1206_v58  ;;  %v3069_v26 = vand.u32 2147483647, %v1218_v56  ;;  %v4540_v43 = vld [vmem:[#allocation51_spill] sm:$0xff] }
 0x308   : > { %v3071_v58 = vand.u32 2147483647, %v1220_v8  ;;  %v4543_v56 = vld [vmem:[#allocation31_spill] sm:$0xff]  ;;  %v956_v1 = vmul.f32 0.5, %v4562_v32  ;;  %4563 = vst [vmem:[#allocation50_spill] sm:$0xff] %v3141_v37  ;;  %v3143_v8 = vpop.permute.xlu0 %1605  ;;  %v4566_v49 = vld [vmem:[#allocation36_spill] sm:$0xff] }
 0x309   : > { %4537 = vst [vmem:[#allocation60_spill] sm:$0xff] %v3069_v26  ;;  %4564 = vst [vmem:[#allocation51_spill] sm:$0xff] %v3143_v8  ;;  %v4570_v29 = vld [vmem:[#allocation2_spill] sm:$0xff]  ;;  %v4571_v31 = vld [vmem:[#allocation39_spill] sm:$0xff]  ;;  %v4583_v32 = vsub.f32 1.0, %v2840_v59  ;;  %v4585_v37 = vsub.f32 1.0, %v2842_v35 }
 0x30a   : > { %v3165_v17 = vrot.slane %v956_v1, %v4570_v29  ;;  %v4573_v63 = vld [vmem:[#allocation56_spill] sm:$0xff]  ;;  %v4574_v44 = vld [vmem:[#allocation57_spill] sm:$0xff]  ;;  %v4575_v1 = vld [vmem:[#allocation15_spill] sm:$0xff]  ;;  %v4581_v29 = vsub.f32 1.0, %v2838_v21  ;;  %v4592_v21 = vsub.f32 1.0, %v2850_v42  ;;  %v4594_v59 = vsub.f32 1.0, %v2854_v0 }
 0x30b   : > { %v4577_v14 = vld [vmem:[#allocation23_spill] sm:$0xff]  ;;  %v4578_v34 = vld [vmem:[#allocation46_spill] sm:$0xff]  ;;  %v3204_v2 = vmax.f32 %v4583_v32, 0.0  ;;  %v3208_v8 = vmax.f32 %v4585_v37, 0.0  ;;  %v4597_v35 = vsub.f32 1.0, %v4596_v4  ;;  %v4604_v42 = vsub.f32 1.0, %v2864_v45 }
 0x30c   : > { %v4579_v40 = vsub.f32 1.0, %v4578_v34  ;;  %v3200_v20 = vmax.f32 %v4581_v29, 0.0  ;;  %v4587_v5 = vld [vmem:[#allocation47_spill] sm:$0xff]  ;;  %v4590_v34 = vsub.f32 1.0, %v2848_v62  ;;  %v3220_v29 = vmax.f32 %v4592_v21, 0.0 }
 0x30d   : > { %4584 = vst [vmem:[#allocation31_spill] sm:$0xff] %v3204_v2  ;;  %4586 = vst [vmem:[#allocation42_spill] sm:$0xff] %v3208_v8  ;;  %v4588_v7 = vsub.f32 1.0, %v4587_v5  ;;  %v3224_v32 = vmax.f32 %v4594_v59, 0.0  ;;  %v3228_v37 = vmax.f32 %v4597_v35, 0.0  ;;  %v4602_v62 = vsub.f32 1.0, %v2862_v12 }
 0x30e   : > { %v4576_v11 = vld [vmem:[#allocation18_spill] sm:$0xff]  ;;  %v3196_v18 = vmax.f32 %v4579_v40, 0.0  ;;  %4582 = vst [vmem:[#allocation30_spill] sm:$0xff] %v3200_v20  ;;  %v3216_v40 = vmax.f32 %v4590_v34, 0.0  ;;  %4593 = vst [vmem:[#allocation39_spill] sm:$0xff] %v3220_v29  ;;  %v4599_v20 = vld [vmem:[#allocation49_spill] sm:$0xff] }
 0x30f   : > { %v3212_v26 = vmax.f32 %v4588_v7, 0.0  ;;  %4595 = vst [vmem:[#allocation56_spill] sm:$0xff] %v3224_v32  ;;  %4598 = vst [vmem:[#allocation57_spill] sm:$0xff] %v3228_v37  ;;  %v4600_v5 = vsub.f32 1.0, %v4599_v20  ;;  %v3236_v34 = vmax.f32 %v4602_v62, 0.0  ;;  %v3240_v21 = vmax.f32 %v4604_v42, 0.0 }
 0x310   : > { %4580 = vst [vmem:[#allocation52_spill] sm:$0xff] %v3196_v18  ;;  %4591 = vst [vmem:[#allocation2_spill] sm:$0xff] %v3216_v40  ;;  %v4606_v0 = vsub.f32 1.0, %v4539_v22  ;;  %v4608_v4 = vsub.f32 1.0, %v2870_v61  ;;  %v4610_v20 = vsub.f32 1.0, %v4540_v43  ;;  %v4612_v12 = vsub.f32 1.0, %v4541_v55 }
 0x311   : > { %4589 = vst [vmem:[#allocation36_spill] sm:$0xff] %v3212_v26  ;;  %v3232_v7 = vmax.f32 %v4600_v5, 0.0  ;;  %4603 = vst [vmem:[#allocation18_spill] sm:$0xff] %v3236_v34  ;;  %v4614_v45 = vsub.f32 1.0, %v2878_v3  ;;  %v4616_v22 = vsub.f32 1.0, %v2880_v50  ;;  %v4618_v61 = vsub.f32 1.0, %v2882_v53 }
 0x312   : > { %4605 = vst [vmem:[#allocation23_spill] sm:$0xff] %v3240_v21  ;;  %v3244_v59 = vmax.f32 %v4606_v0, 0.0  ;;  %v3248_v35 = vmax.f32 %v4608_v4, 0.0  ;;  %v3252_v5 = vmax.f32 %v4610_v20, 0.0  ;;  %v3256_v62 = vmax.f32 %v4612_v12, 0.0  ;;  %v4620_v18 = vld [vmem:[#allocation3_spill] sm:$0xff] }
 0x313   : > { %4601 = vst [vmem:[#allocation15_spill] sm:$0xff] %v3232_v7  ;;  %v3260_v42 = vmax.f32 %v4614_v45, 0.0  ;;  %v3264_v0 = vmax.f32 %v4616_v22, 0.0  ;;  %v3268_v4 = vmax.f32 %v4618_v61, 0.0  ;;  %v4621_v20 = vsub.f32 1.0, %v4542_v57  ;;  %v4625_v45 = vld [vmem:[#allocation40_spill] sm:$0xff] }
 0x314   : > { %4607 = vst [vmem:[#allocation46_spill] sm:$0xff] %v3244_v59  ;;  %4609 = vst [vmem:[#allocation47_spill] sm:$0xff] %v3248_v35  ;;  %v4623_v12 = vsub.f32 1.0, %v4543_v56  ;;  %v4628_v22 = vsub.f32 1.0, %v2895_v36  ;;  %v4630_v61 = vsub.f32 1.0, %v2897_v33  ;;  %v4632_v43 = vld [vmem:[#allocation34_spill] sm:$0xff] }
 0x315   : > { %4611 = vst [vmem:[#allocation48_spill] sm:$0xff] %v3252_v5  ;;  %4613 = vst [vmem:[#allocation49_spill] sm:$0xff] %v3256_v62  ;;  %v3274_v55 = vmax.f32 %v4621_v20, 0.0  ;;  %v4633_v57 = vsub.f32 1.0, %v4632_v43  ;;  %v4635_v56 = vsub.f32 1.0, %v2901_v48  ;;  %v4642_v33 = vsub.f32 1.0, %v2912_v25 }
 0x316   : > { %4615 = vst [vmem:[#allocation61_spill] sm:$0xff] %v3260_v42  ;;  %4617 = vst [vmem:[#allocation62_spill] sm:$0xff] %v3264_v0  ;;  %v3278_v3 = vmax.f32 %v4623_v12, 0.0  ;;  %v4626_v42 = vsub.f32 1.0, %v4625_v45  ;;  %v3286_v53 = vmax.f32 %v4628_v22, 0.0  ;;  %v4637_v45 = vsub.f32 1.0, %v2903_v41 }
 0x317   : > { %4619 = vst [vmem:[#allocation63_spill] sm:$0xff] %v3268_v4  ;;  %4622 = vst [vmem:[#allocation3_spill] sm:$0xff] %v3274_v55  ;;  %v3290_v4 = vmax.f32 %v4630_v61, 0.0  ;;  %v3294_v20 = vmax.f32 %v4633_v57, 0.0  ;;  %v3298_v12 = vmax.f32 %v4635_v56, 0.0  ;;  %v3310_v61 = vmax.f32 %v4642_v33, 0.0 }
 0x318   : > { %4624 = vst [vmem:[#allocation64_spill] sm:$0xff] %v3278_v3  ;;  %v3282_v50 = vmax.f32 %v4626_v42, 0.0  ;;  %4629 = vst [vmem:[#allocation65_spill] sm:$0xff] %v3286_v53  ;;  %v3302_v42 = vmax.f32 %v4637_v45, 0.0  ;;  %v4644_v43 = vsub.f32 1.0, %v2914_v24  ;;  %v4654_v33 = vld [vmem:[#allocation6_spill] sm:$0xff] }
 0x319   : > { %4631 = vst [vmem:[#allocation66_spill] sm:$0xff] %v3290_v4  ;;  %4634 = vst [vmem:[#allocation34_spill] sm:$0xff] %v3294_v20  ;;  %v4646_v20 = vld [vmem:[#allocation53_spill] sm:$0xff]  ;;  %v4655_v24 = vld [vmem:[#allocation7_spill] sm:$0xff]  ;;  %v4675_v25 = vsub.f32 %v2906_v28, %v4654_v33 }
 0x31a   : > { %4627 = vst [vmem:[#allocation40_spill] sm:$0xff] %v3282_v50  ;;  %4636 = vst [vmem:[#allocation67_spill] sm:$0xff] %v3298_v12  ;;  %v4639_v50 = vld [vmem:[#allocation35_spill] sm:$0xff]  ;;  %v3314_v57 = vmax.f32 %v4644_v43, 0.0  ;;  %v4647_v48 = vsub.f32 1.0, %v4646_v20  ;;  %v4649_v12 = vld [vmem:[#allocation54_spill] sm:$0xff] }
 0x31b   : > { %4638 = vst [vmem:[#allocation68_spill] sm:$0xff] %v3302_v42  ;;  %v4640_v36 = vsub.f32 1.0, %v4639_v50  ;;  %4643 = vst [vmem:[#allocation69_spill] sm:$0xff] %v3310_v61  ;;  %v4650_v41 = vsub.f32 1.0, %v4649_v12  ;;  %v4652_v42 = vld [vmem:[#allocation4_spill] sm:$0xff]  ;;  %v4661_v4 = vld [vmem:[#allocation13_spill] sm:$0xff]  ;;  %v4668_v61 = vsub.f32 %v2906_v28, %v4620_v18 }
 0x31c   : > { %4645 = vst [vmem:[#allocation70_spill] sm:$0xff] %v3314_v57  ;;  %v3318_v56 = vmax.f32 %v4647_v48, 0.0  ;;  %v4656_v57 = vld [vmem:[#allocation8_spill] sm:$0xff]  ;;  %v4657_v48 = vld [vmem:[#allocation9_spill] sm:$0xff]  ;;  %v4662_v53 = vld [vmem:[#allocation14_spill] sm:$0xff]  ;;  %v4670_v20 = vsub.f32 %v2906_v28, %v4652_v42 }
 0x31d   : > { %v3306_v22 = vmax.f32 %v4640_v36, 0.0  ;;  %v3322_v45 = vmax.f32 %v4650_v41, 0.0  ;;  %v4653_v36 = vld [vmem:[#allocation5_spill] sm:$0xff]  ;;  %v4658_v41 = vld [vmem:[#allocation10_spill] sm:$0xff]  ;;  %v4663_v3 = vld [vmem:[#allocation16_spill] sm:$0xff]  ;;  %v4682_v50 = vsub.f32 %v2906_v28, %v4657_v48 }
 0x31e   : > { %4648 = vst [vmem:[#allocation53_spill] sm:$0xff] %v3318_v56  ;;  %v4659_v56 = vld [vmem:[#allocation11_spill] sm:$0xff]  ;;  %v4664_v55 = vld [vmem:[#allocation17_spill] sm:$0xff]  ;;  %v4666_v62 = vld [vmem:[#allocation20_spill] sm:$0xff]  ;;  %v3359_v35 = vand.u32 2147483647, %v4668_v61  ;;  %v4672_v12 = vsub.f32 %v2906_v28, %v4653_v36  ;;  %v4677_v61 = vsub.f32 %v2906_v28, %v4655_v24  ;;  %v4696_v26 = vsub.f32 %v2906_v28, %v4663_v3 }
 0x31f   : > { %4641 = vst [vmem:[#allocation35_spill] sm:$0xff] %v3306_v22  ;;  %4651 = vst [vmem:[#allocation54_spill] sm:$0xff] %v3322_v45  ;;  %v4660_v22 = vld [vmem:[#allocation12_spill] sm:$0xff]  ;;  %v4665_v0 = vld [vmem:[#allocation19_spill] sm:$0xff]  ;;  %v3364_v43 = vand.u32 2147483647, %v4670_v20  ;;  %v4679_v20 = vsub.f32 %v2906_v28, %v4656_v57 }
 0x320   : > { %v4667_v5 = vld [vmem:[#allocation21_spill] sm:$0xff]  ;;  %4669 = vst [vmem:[#allocation4_spill] sm:$0xff] %v3359_v35  ;;  %v3369_v45 = vand.u32 2147483647, %v4672_v12  ;;  %v4674_v59 = vld [vmem:[#allocation22_spill] sm:$0xff]  ;;  %v4681_v12 = vld [vmem:[#allocation24_spill] sm:$0xff]  ;;  %v4689_v37 = vsub.f32 %v2906_v28, %v4660_v22 }
 0x321   : > { %4671 = vst [vmem:[#allocation5_spill] sm:$0xff] %v3364_v43  ;;  %v3376_v21 = vand.u32 2147483647, %v4675_v25  ;;  %v3381_v34 = vand.u32 2147483647, %v4677_v61  ;;  %v4684_v25 = vsub.f32 %v2906_v28, %v4658_v41  ;;  %v4686_v61 = vsub.f32 %v2906_v28, %v4659_v56 }
 0x322   : > { %4673 = vst [vmem:[#allocation6_spill] sm:$0xff] %v3369_v45  ;;  %v3386_v7 = vand.u32 2147483647, %v4679_v20  ;;  %v3393_v32 = vand.u32 2147483647, %v4682_v50  ;;  %v4688_v20 = vld [vmem:[#allocation25_spill] sm:$0xff]  ;;  %v4691_v50 = vsub.f32 %v2906_v28, %v4661_v4 }
 0x323   : > { %4676 = vst [vmem:[#allocation7_spill] sm:$0xff] %v3376_v21  ;;  %4678 = vst [vmem:[#allocation8_spill] sm:$0xff] %v3381_v34  ;;  %v3398_v29 = vand.u32 2147483647, %v4684_v25  ;;  %v3403_v40 = vand.u32 2147483647, %v4686_v61  ;;  %v4693_v25 = vsub.f32 %v2906_v28, %v4662_v53 }
 0x324   : > { %4680 = vst [vmem:[#allocation9_spill] sm:$0xff] %v3386_v7  ;;  %4683 = vst [vmem:[#allocation10_spill] sm:$0xff] %v3393_v32  ;;  %v3410_v8 = vand.u32 2147483647, %v4689_v37  ;;  %v3415_v2 = vand.u32 2147483647, %v4691_v50  ;;  %v4698_v37 = vsub.f32 %v2906_v28, %v4664_v55  ;;  %v4700_v50 = vsub.f32 %v2906_v28, %v4665_v0 }
 0x325   : > { %4685 = vst [vmem:[#allocation11_spill] sm:$0xff] %v3398_v29  ;;  %4687 = vst [vmem:[#allocation12_spill] sm:$0xff] %v3403_v40  ;;  %v3420_v29 = vand.u32 2147483647, %v4693_v25  ;;  %v4695_v61 = vld [vmem:[#allocation26_spill] sm:$0xff]  ;;  %v4702_v25 = vld [vmem:[#allocation27_spill] sm:$0xff]  ;;  %v4703_v40 = vsub.f32 %v2906_v28, %v4666_v62 }
 0x326   : > { %4690 = vst [vmem:[#allocation13_spill] sm:$0xff] %v3410_v8  ;;  %4692 = vst [vmem:[#allocation14_spill] sm:$0xff] %v3415_v2  ;;  %v3427_v32 = vand.u32 2147483647, %v4696_v26  ;;  %v3432_v8 = vand.u32 2147483647, %v4698_v37  ;;  %v4705_v26 = vsub.f32 %v2906_v28, %v4667_v5  ;;  %v4707_v37 = vsub.f32 %v2906_v28, %v4674_v59 }
 0x327   : > { %4694 = vst [vmem:[#allocation16_spill] sm:$0xff] %v3420_v29  ;;  %v3437_v2 = vand.u32 2147483647, %v4700_v50  ;;  %v3444_v7 = vand.u32 2147483647, %v4703_v40  ;;  %v4709_v50 = vld [vmem:[#allocation28_spill] sm:$0xff]  ;;  %v4710_v29 = vsub.f32 %v2906_v28, %v4681_v12  ;;  %v4712_v40 = vsub.f32 %v2906_v28, %v4688_v20 }
 0x328   : > { %4697 = vst [vmem:[#allocation17_spill] sm:$0xff] %v3427_v32  ;;  %4699 = vst [vmem:[#allocation19_spill] sm:$0xff] %v3432_v8  ;;  %v3449_v32 = vand.u32 2147483647, %v4705_v26  ;;  %v3454_v8 = vand.u32 2147483647, %v4707_v37  ;;  %v4714_v26 = vsub.f32 %v2906_v28, %v4695_v61 }
 0x329   : > { %4701 = vst [vmem:[#allocation20_spill] sm:$0xff] %v3437_v2  ;;  %4704 = vst [vmem:[#allocation21_spill] sm:$0xff] %v3444_v7  ;;  %v3461_v34 = vand.u32 2147483647, %v4710_v29  ;;  %v3466_v7 = vand.u32 2147483647, %v4712_v40  ;;  %v4717_v2 = vsub.f32 %v2906_v28, %v4702_v25  ;;  %v4719_v29 = vsub.f32 %v2906_v28, %v4709_v50 }
 0x32a   : > { %4706 = vst [vmem:[#allocation22_spill] sm:$0xff] %v3449_v32  ;;  %4708 = vst [vmem:[#allocation24_spill] sm:$0xff] %v3454_v8  ;;  %v3471_v32 = vand.u32 2147483647, %v4714_v26  ;;  %v4716_v37 = vld [vmem:[#allocation29_spill] sm:$0xff]  ;;  %v4723_v26 = vld [vmem:[#allocation32_spill] sm:$0xff] }
 0x32b   : > { %4711 = vst [vmem:[#allocation71_spill] sm:$0xff] %v3461_v34  ;;  %4713 = vst [vmem:[#allocation72_spill] sm:$0xff] %v3466_v7  ;;  %v3478_v21 = vand.u32 2147483647, %v4717_v2  ;;  %v3483_v34 = vand.u32 2147483647, %v4719_v29  ;;  %v4721_v40 = vsub.f32 %v2906_v28, %v4716_v37  ;;  %v4724_v8 = vsub.f32 %v2906_v28, %v4723_v26 }
 0x32c   : > { %4715 = vst [vmem:[#allocation73_spill] sm:$0xff] %v3471_v32  ;;  %v4726_v2 = vld [vmem:[#allocation33_spill] sm:$0xff]  ;;  %v4729_v29 = vsub.f32 %v2906_v28, %v4566_v49 }
 0x32d   : > { %4718 = vst [vmem:[#allocation74_spill] sm:$0xff] %v3478_v21  ;;  %4720 = vst [vmem:[#allocation75_spill] sm:$0xff] %v3483_v34  ;;  %v3488_v7 = vand.u32 2147483647, %v4721_v40  ;;  %v3495_v45 = vand.u32 2147483647, %v4724_v8  ;;  %v4727_v21 = vsub.f32 %v2906_v28, %v4726_v2 }
 0x32e   : > { %v3505_v34 = vand.u32 2147483647, %v4729_v29  ;;  %v4731_v32 = vld [vmem:[#allocation37_spill] sm:$0xff]  ;;  %v4740_v29 = vld [vmem:[#allocation51_spill] sm:$0xff]  ;;  %v4743_v40 = vld [vmem:[#allocation50_spill] sm:$0xff] }
 0x32f   : > { %4722 = vst [vmem:[#allocation76_spill] sm:$0xff] %v3488_v7  ;;  %4725 = vst [vmem:[#allocation77_spill] sm:$0xff] %v3495_v45  ;;  %v3500_v43 = vand.u32 2147483647, %v4727_v21  ;;  %v4732_v7 = vsub.f32 %v2906_v28, %v4731_v32  ;;  %v4734_v8 = vld [vmem:[#allocation41_spill] sm:$0xff]  ;;  %v4737_v21 = vld [vmem:[#allocation43_spill] sm:$0xff]  ;;  %v4744_v2 = vsub.f32 %v2906_v28, %v4743_v40 }
 0x330   : > { %4730 = vst [vmem:[#allocation79_spill] sm:$0xff] %v3505_v34  ;;  %v4735_v45 = vsub.f32 %v2906_v28, %v4734_v8  ;;  %v4741_v34 = vsub.f32 %v2906_v28, %v4740_v29 }
 0x331   : > { %4728 = vst [vmem:[#allocation78_spill] sm:$0xff] %v3500_v43  ;;  %v3512_v35 = vand.u32 2147483647, %v4732_v7  ;;  %v4738_v43 = vsub.f32 %v2906_v28, %v4737_v21  ;;  %v3532_v7 = vand.u32 2147483647, %v4744_v2  ;;  %v4756_v28 = vsub.f32 1.0, %v2950_v9 }
 0x332   : > { %v3517_v26 = vand.u32 2147483647, %v4735_v45  ;;  %v3527_v50 = vand.u32 2147483647, %v4741_v34  ;;  %v4754_v34 = vsub.f32 1.0, %v2945_v13  ;;  %v4764_v13 = vld [vmem:[#allocation44_spill] sm:$0xff] }
 0x333   : > { %4733 = vst [vmem:[#allocation37_spill] sm:$0xff] %v3512_v35  ;;  %v3522_v37 = vand.u32 2147483647, %v4738_v43  ;;  %4745 = vst [vmem:[#allocation50_spill] sm:$0xff] %v3532_v7  ;;  %v4746_v35 = vsub.f32 1.0, %v2928_v51  ;;  %v4751_v43 = vld [vmem:[#allocation55_spill] sm:$0xff] }
 0x334   : > { %4736 = vst [vmem:[#allocation41_spill] sm:$0xff] %v3517_v26  ;;  %4742 = vst [vmem:[#allocation51_spill] sm:$0xff] %v3527_v50  ;;  %v4748_v26 = vld [vmem:[#allocation38_spill] sm:$0xff]  ;;  %v3548_v50 = vmax.f32 %v4754_v34, 0.0  ;;  %v3552_v2 = vmax.f32 %v4756_v28, 0.0  ;;  %v4758_v51 = vsub.f32 1.0, %v4571_v31 }
 0x335   : > { %4739 = vst [vmem:[#allocation43_spill] sm:$0xff] %v3522_v37  ;;  %v3536_v45 = vmax.f32 %v4746_v35, 0.0  ;;  %v4749_v25 = vsub.f32 1.0, %v4748_v26  ;;  %v4752_v37 = vsub.f32 1.0, %v4751_v43  ;;  %v4765_v34 = vsub.f32 1.0, %v4764_v13  ;;  %v4767_v9 = vld [vmem:[#allocation45_spill] sm:$0xff] }
 0x336   : > { %4755 = vst [vmem:[#allocation81_spill] sm:$0xff] %v3548_v50  ;;  %4757 = vst [vmem:[#allocation82_spill] sm:$0xff] %v3552_v2  ;;  %v3556_v35 = vmax.f32 %v4758_v51, 0.0  ;;  %v4770_v31 = vsub.f32 1.0, %v4573_v63  ;;  %v4776_v13 = vsub.f32 1.0, %v2999_v52  ;;  %v4780_v63 = vsub.f32 1.0, %v3011_v16 }
 0x337   : > { %4747 = vst [vmem:[#allocation80_spill] sm:$0xff] %v3536_v45  ;;  %v3540_v61 = vmax.f32 %v4749_v25, 0.0  ;;  %v3544_v20 = vmax.f32 %v4752_v37, 0.0  ;;  %v4760_v25 = vsub.f32 1.0, %v2962_v30  ;;  %v4762_v37 = vsub.f32 1.0, %v2967_v60  ;;  %v4884_v2 = vld [vmem:[#allocation71_spill] sm:$0xff] }
 0x338   : > { %4759 = vst [vmem:[#allocation83_spill] sm:$0xff] %v3556_v35  ;;  %v3568_v50 = vmax.f32 %v4765_v34, 0.0  ;;  %v3576_v51 = vmax.f32 %v4770_v31, 0.0  ;;  %v4772_v30 = vsub.f32 1.0, %v4574_v44  ;;  %v4774_v60 = vsub.f32 1.0, %v2994_v6  ;;  %v4883_v35 = vld [vmem:[#allocation24_spill] sm:$0xff] }
 0x339   : > { %4750 = vst [vmem:[#allocation38_spill] sm:$0xff] %v3540_v61  ;;  %4753 = vst [vmem:[#allocation55_spill] sm:$0xff] %v3544_v20  ;;  %v3560_v26 = vmax.f32 %v4760_v25, 0.0  ;;  %v3564_v43 = vmax.f32 %v4762_v37, 0.0  ;;  %v4768_v20 = vsub.f32 1.0, %v4767_v9  ;;  %v3588_v34 = vmax.f32 %v4776_v13, 0.0 }
 0x33a   : > { %4766 = vst [vmem:[#allocation44_spill] sm:$0xff] %v3568_v50  ;;  %4771 = vst [vmem:[#allocation86_spill] sm:$0xff] %v3576_v51  ;;  %v3580_v25 = vmax.f32 %v4772_v30, 0.0  ;;  %v3584_v37 = vmax.f32 %v4774_v60, 0.0  ;;  %v3597_v31 = vmax.f32 %v4780_v63, 0.0  ;;  %v4782_v44 = vsub.f32 1.0, %v3016_v15 }
 0x33b   : > { %4761 = vst [vmem:[#allocation84_spill] sm:$0xff] %v3560_v26  ;;  %4763 = vst [vmem:[#allocation85_spill] sm:$0xff] %v3564_v43  ;;  %v3572_v28 = vmax.f32 %v4768_v20, 0.0  ;;  %v4778_v20 = vsub.f32 1.0, %v4575_v1  ;;  %v4784_v6 = vsub.f32 1.0, %v3021_v23  ;;  %v4786_v52 = vsub.f32 1.0, %v3028_v10 }
 0x33c   : > { %4773 = vst [vmem:[#allocation87_spill] sm:$0xff] %v3580_v25  ;;  %4775 = vst [vmem:[#allocation88_spill] sm:$0xff] %v3584_v37  ;;  %v3601_v30 = vmax.f32 %v4782_v44, 0.0  ;;  %v4788_v1 = vsub.f32 1.0, %v4576_v11  ;;  %v4790_v13 = vsub.f32 1.0, %v4577_v14  ;;  %v4798_v10 = vsub.f32 1.0, %v3049_v27 }
 0x33d   : > { %4769 = vst [vmem:[#allocation45_spill] sm:$0xff] %v3572_v28  ;;  %4777 = vst [vmem:[#allocation89_spill] sm:$0xff] %v3588_v34  ;;  %v3593_v9 = vmax.f32 %v4778_v20, 0.0  ;;  %v3605_v60 = vmax.f32 %v4784_v6, 0.0  ;;  %v3616_v16 = vmax.f32 %v4786_v52, 0.0  ;;  %v4792_v20 = vld [vmem:[#allocation58_spill] sm:$0xff] }
 0x33e   : > { %4781 = vst [vmem:[#allocation91_spill] sm:$0xff] %v3597_v31  ;;  %4783 = vst [vmem:[#allocation92_spill] sm:$0xff] %v3601_v30  ;;  %v3620_v15 = vmax.f32 %v4788_v1, 0.0  ;;  %v3624_v23 = vmax.f32 %v4790_v13, 0.0  ;;  %v4793_v63 = vsub.f32 1.0, %v4792_v20  ;;  %v1934_v6 = vld [vmem:[%s3612_s18 + $0x8] sm:$0xff] }
 0x33f   : > { %4779 = vst [vmem:[#allocation90_spill] sm:$0xff] %v3593_v9  ;;  %4785 = vst [vmem:[#allocation93_spill] sm:$0xff] %v3605_v60  ;;  %v4795_v60 = vld [vmem:[#allocation59_spill] sm:$0xff]  ;;  %v3637_v52 = vmax.f32 %v4798_v10, 0.0  ;;  %v4800_v11 = vsub.f32 1.0, %v3053_v19  ;;  %v4802_v14 = vsub.f32 1.0, %v3055_v46  ;;  %1999 = vmatprep.mubr.f32.mxu1 %v1934_v6 }
 0x340   : > { %4787 = vst [vmem:[#allocation94_spill] sm:$0xff] %v3616_v16  ;;  %4789 = vst [vmem:[#allocation95_spill] sm:$0xff] %v3620_v15  ;;  %v3628_v44 = vmax.f32 %v4793_v63, 0.0  ;;  %v4796_v30 = vsub.f32 1.0, %v4795_v60  ;;  %v4804_v20 = vsub.f32 1.0, %v3057_v38  ;;  %v4808_v27 = vsub.f32 1.0, %v3063_v47 }
 0x341   : > { %4791 = vst [vmem:[#allocation96_spill] sm:$0xff] %v3624_v23  ;;  %4799 = vst [vmem:[#allocation97_spill] sm:$0xff] %v3637_v52  ;;  %v3641_v1 = vmax.f32 %v4800_v11, 0.0  ;;  %v3645_v13 = vmax.f32 %v4802_v14, 0.0  ;;  %v4810_v19 = vsub.f32 1.0, %v3065_v54  ;;  %v4812_v46 = vld [vmem:[#allocation60_spill] sm:$0xff]  ;;  %v4818_v47 = vsub.f32 %v3165_v17, %v4652_v42 }
 0x342   : > { %4794 = vst [vmem:[#allocation58_spill] sm:$0xff] %v3628_v44  ;;  %v3633_v31 = vmax.f32 %v4796_v30, 0.0  ;;  %v3649_v63 = vmax.f32 %v4804_v20, 0.0  ;;  %v4806_v30 = vsub.f32 1.0, %v3061_v39  ;;  %v3657_v10 = vmax.f32 %v4808_v27, 0.0  ;;  %v4867_v52 = vld [vmem:[#allocation5_spill] sm:$0xff] }
 0x343   : > { %4801 = vst [vmem:[#allocation98_spill] sm:$0xff] %v3641_v1  ;;  %4803 = vst [vmem:[#allocation99_spill] sm:$0xff] %v3645_v13  ;;  %v3661_v11 = vmax.f32 %v4810_v19, 0.0  ;;  %v4813_v14 = vsub.f32 1.0, %v4812_v46  ;;  %v4815_v38 = vsub.f32 1.0, %v3071_v58  ;;  %v4817_v39 = vsub.f32 %v3165_v17, %v4620_v18  ;;  %v4871_v23 = vld [vmem:[#allocation9_spill] sm:$0xff] }
 0x344   : > { %4797 = vst [vmem:[#allocation59_spill] sm:$0xff] %v3633_v31  ;;  %4805 = vst [vmem:[#allocation100_spill] sm:$0xff] %v3649_v63  ;;  %v3653_v60 = vmax.f32 %v4806_v30, 0.0  ;;  %v3679_v30 = vand.u32 2147483647, %v4818_v47  ;;  %v1666_v54 = vsub.f32 %v3165_v17, %v4566_v49  ;;  %v4819_v27 = vsub.f32 %v3165_v17, %v4653_v36  ;;  %v4872_v15 = vld [vmem:[#allocation10_spill] sm:$0xff] }
 0x345   : > { %4809 = vst [vmem:[#allocation102_spill] sm:$0xff] %v3657_v10  ;;  %4811 = vst [vmem:[#allocation103_spill] sm:$0xff] %v3661_v11  ;;  %v3665_v13 = vmax.f32 %v4813_v14, 0.0  ;;  %v3669_v6 = vmax.f32 %v4815_v38, 0.0  ;;  %v3674_v20 = vand.u32 2147483647, %v4817_v39  ;;  %v4820_v58 = vsub.f32 %v3165_v17, %v4654_v33 }
 0x346   : > { %4807 = vst [vmem:[#allocation101_spill] sm:$0xff] %v3653_v60  ;;  %v3686_v19 = vand.u32 2147483647, %v4819_v27  ;;  %v4821_v18 = vsub.f32 %v3165_v17, %v4655_v24  ;;  %v1668_v42 = vsub.f32 %v3165_v17, %v4731_v32  ;;  %v4822_v49 = vsub.f32 %v3165_v17, %v4656_v57  ;;  %v4855_v11 = vld [vmem:[#allocation32_spill] sm:$0xff]  ;;  %v4858_v10 = vld [vmem:[#allocation33_spill] sm:$0xff]  ;;  %v4873_v16 = vld [vmem:[#allocation11_spill] sm:$0xff] }
 0x347   : > { %4814 = vst [vmem:[#allocation60_spill] sm:$0xff] %v3665_v13  ;;  %4816 = vst [vmem:[#allocation104_spill] sm:$0xff] %v3669_v6  ;;  %v3691_v46 = vand.u32 2147483647, %v4820_v58  ;;  %v4823_v36 = vsub.f32 %v3165_v17, %v4657_v48  ;;  %v4824_v33 = vsub.f32 %v3165_v17, %v4658_v41  ;;  %v1670_v24 = vsub.f32 %v3165_v17, %v4734_v8  ;;  %v4849_v6 = vld [vmem:[#allocation28_spill] sm:$0xff]  ;;  %v4852_v13 = vld [vmem:[#allocation29_spill] sm:$0xff] }
 0x348   : > { %v3696_v14 = vand.u32 2147483647, %v4821_v18  ;;  %v3703_v38 = vand.u32 2147483647, %v4822_v49  ;;  %v4825_v32 = vsub.f32 %v3165_v17, %v4659_v56  ;;  %v4826_v57 = vsub.f32 %v3165_v17, %v4660_v22  ;;  %v4874_v9 = vld [vmem:[#allocation12_spill] sm:$0xff]  ;;  %v4875_v34 = vld [vmem:[#allocation13_spill] sm:$0xff] }
 0x349   : > { %v3708_v39 = vand.u32 2147483647, %v4823_v36  ;;  %v3713_v47 = vand.u32 2147483647, %v4824_v33  ;;  %v4827_v48 = vsub.f32 %v3165_v17, %v4661_v4  ;;  %v1672_v41 = vsub.f32 %v3165_v17, %v4737_v21  ;;  %v4876_v37 = vld [vmem:[#allocation14_spill] sm:$0xff]  ;;  %v4877_v25 = vld [vmem:[#allocation16_spill] sm:$0xff] }
 0x34a   : > { %v3720_v27 = vand.u32 2147483647, %v4825_v32  ;;  %v3725_v58 = vand.u32 2147483647, %v4826_v57  ;;  %v4828_v8 = vsub.f32 %v3165_v17, %v4662_v53  ;;  %v4829_v56 = vsub.f32 %v3165_v17, %v4663_v3  ;;  %v4878_v51 = vld [vmem:[#allocation17_spill] sm:$0xff]  ;;  %v4879_v28 = vld [vmem:[#allocation19_spill] sm:$0xff] }
 0x34b   : > { %v3730_v18 = vand.u32 2147483647, %v4827_v48  ;;  %v4830_v22 = vsub.f32 %v3165_v17, %v4664_v55  ;;  %v1674_v4 = vsub.f32 %v3165_v17, %v4740_v29  ;;  %v4831_v21 = vsub.f32 %v3165_v17, %v4665_v0  ;;  %v4880_v50 = vld [vmem:[#allocation20_spill] sm:$0xff]  ;;  %v4881_v43 = vld [vmem:[#allocation21_spill] sm:$0xff]  ;;  %v4882_v26 = vld [vmem:[#allocation22_spill] sm:$0xff] }
 0x34c   : > { %v3737_v49 = vand.u32 2147483647, %v4828_v8  ;;  %v3742_v36 = vand.u32 2147483647, %v4829_v56  ;;  %v4832_v53 = vsub.f32 %v3165_v17, %v4666_v62  ;;  %v4834_v3 = vsub.f32 %v3165_v17, %v4667_v5  ;;  %v4840_v62 = vld [vmem:[#allocation25_spill] sm:$0xff]  ;;  %v4843_v5 = vld [vmem:[#allocation26_spill] sm:$0xff] }
 0x34d   : > { %v3747_v33 = vand.u32 2147483647, %v4830_v22  ;;  %v3754_v32 = vand.u32 2147483647, %v4831_v21  ;;  %v1676_v55 = vsub.f32 %v3165_v17, %v4743_v40  ;;  %v4836_v29 = vsub.f32 %v3165_v17, %v4674_v59  ;;  %v4846_v40 = vld [vmem:[#allocation27_spill] sm:$0xff]  ;;  %v4885_v61 = vld [vmem:[#allocation72_spill] sm:$0xff] }
 0x34e   : > { %v3759_v57 = vand.u32 2147483647, %v4832_v53  ;;  %v3764_v48 = vand.u32 2147483647, %v4834_v3  ;;  %v4838_v0 = vsub.f32 %v3165_v17, %v4681_v12  ;;  %v4841_v22 = vsub.f32 %v3165_v17, %v4840_v62  ;;  %v4886_v45 = vld [vmem:[#allocation73_spill] sm:$0xff] }
 0x34f   : > { %v3771_v8 = vand.u32 2147483647, %v4836_v29  ;;  %v4844_v53 = vsub.f32 %v3165_v17, %v4843_v5  ;;  %v4847_v59 = vsub.f32 %v3165_v17, %v4846_v40  ;;  %v4850_v12 = vsub.f32 %v3165_v17, %v4849_v6 }
 0x350   : > { %4833 = vst [vmem:[#allocation105_spill] sm:$0xff] %v3759_v57  ;;  %4835 = vst [vmem:[#allocation106_spill] sm:$0xff] %v3764_v48  ;;  %v3776_v56 = vand.u32 2147483647, %v4838_v0  ;;  %v3781_v21 = vand.u32 2147483647, %v4841_v22  ;;  %v4853_v62 = vsub.f32 %v3165_v17, %v4852_v13  ;;  %v4856_v5 = vsub.f32 %v3165_v17, %v4855_v11 }
 0x351   : > { %4837 = vst [vmem:[#allocation107_spill] sm:$0xff] %v3771_v8  ;;  %v3786_v3 = vand.u32 2147483647, %v4844_v53  ;;  %v3791_v29 = vand.u32 2147483647, %v4847_v59  ;;  %v4859_v40 = vsub.f32 %v3165_v17, %v4858_v10  ;;  %v4866_v11 = vld [vmem:[#allocation4_spill] sm:$0xff] }
 0x352   : > { %4839 = vst [vmem:[#allocation108_spill] sm:$0xff] %v3776_v56  ;;  %4842 = vst [vmem:[#allocation25_spill] sm:$0xff] %v3781_v21  ;;  %v3796_v0 = vand.u32 2147483647, %v4850_v12  ;;  %v3801_v22 = vand.u32 2147483647, %v4853_v62 }
 0x353   : > { %4845 = vst [vmem:[#allocation26_spill] sm:$0xff] %v3786_v3  ;;  %4848 = vst [vmem:[#allocation27_spill] sm:$0xff] %v3791_v29  ;;  %v3806_v53 = vand.u32 2147483647, %v4856_v5  ;;  %v3811_v59 = vand.u32 2147483647, %v4859_v40 }
 0x354   : > { %4851 = vst [vmem:[#allocation28_spill] sm:$0xff] %v3796_v0  ;;  %4854 = vst [vmem:[#allocation29_spill] sm:$0xff] %v3801_v22  ;;  %v3813_v60 = vand.u32 2147483647, %v1666_v54  ;;  %v3815_v6 = vand.u32 2147483647, %v1668_v42 }
 0x355   : > { %4857 = vst [vmem:[#allocation32_spill] sm:$0xff] %v3806_v53  ;;  %v3817_v12 = vand.u32 2147483647, %v1670_v24  ;;  %v3819_v63 = vand.u32 2147483647, %v1672_v41  ;;  %v4868_v54 = vld [vmem:[#allocation6_spill] sm:$0xff] }
 0x356   : > { %4860 = vst [vmem:[#allocation33_spill] sm:$0xff] %v3813_v60  ;;  %4861 = vst [vmem:[#allocation109_spill] sm:$0xff] %v3815_v6  ;;  %v3821_v13 = vand.u32 2147483647, %v1674_v4  ;;  %v3823_v62 = vand.u32 2147483647, %v1676_v55 }
 0x357   : > { %4862 = vst [vmem:[#allocation110_spill] sm:$0xff] %v3817_v12  ;;  %4863 = vst [vmem:[#allocation111_spill] sm:$0xff] %v3819_v63  ;;  %v4869_v24 = vld [vmem:[#allocation7_spill] sm:$0xff]  ;;  %v4870_v4 = vld [vmem:[#allocation8_spill] sm:$0xff]  ;;  %v4897_v40 = vsub.f32 1.0, %v4866_v11  ;;  %v4899_v31 = vsub.f32 1.0, %v3674_v20 }
 0x358   : > { %4864 = vst [vmem:[#allocation112_spill] sm:$0xff] %v3821_v13  ;;  %4865 = vst [vmem:[#allocation113_spill] sm:$0xff] %v3823_v62  ;;  %v4887_v57 = vld [vmem:[#allocation74_spill] sm:$0xff]  ;;  %v4888_v48 = vld [vmem:[#allocation75_spill] sm:$0xff]  ;;  %v4901_v44 = vsub.f32 1.0, %v4867_v52  ;;  %v4903_v5 = vsub.f32 1.0, %v3679_v30 }
 0x359   : > { %v4889_v8 = vld [vmem:[#allocation76_spill] sm:$0xff]  ;;  %v4890_v56 = vld [vmem:[#allocation77_spill] sm:$0xff]  ;;  %v4891_v21 = vld [vmem:[#allocation78_spill] sm:$0xff]  ;;  %v3891_v29 = vmax.f32 %v4897_v40, 0.0  ;;  %v3895_v42 = vmax.f32 %v4899_v31, 0.0  ;;  %v4904_v1 = vsub.f32 1.0, %v4868_v54 }
 0x35a   : > { %v4892_v3 = vld [vmem:[#allocation79_spill] sm:$0xff]  ;;  %v3899_v41 = vmax.f32 %v4901_v44, 0.0  ;;  %v1808_v55 = vmax.f32 %v4903_v5, 0.0  ;;  %v4905_v10 = vsub.f32 1.0, %v3686_v19  ;;  %v4906_v11 = vsub.f32 1.0, %v4869_v24 }
 0x35b   : > { %4898 = vst [vmem:[#allocation4_spill] sm:$0xff] %v3891_v29  ;;  %4900 = vst [vmem:[#allocation5_spill] sm:$0xff] %v3895_v42  ;;  %v1809_v17 = vmax.f32 %v4904_v1, 0.0  ;;  %v4907_v20 = vsub.f32 1.0, %v3691_v46  ;;  %v4908_v29 = vsub.f32 1.0, %v4870_v4  ;;  %v4909_v44 = vsub.f32 1.0, %v3696_v14 }
 0x35c   : > { %4902 = vst [vmem:[#allocation6_spill] sm:$0xff] %v3899_v41  ;;  %v1810_v62 = vmax.f32 %v4905_v10, 0.0  ;;  %v1811_v40 = vmax.f32 %v4906_v11, 0.0  ;;  %v4910_v30 = vsub.f32 1.0, %v4871_v23  ;;  %v4911_v1 = vsub.f32 1.0, %v3703_v38 }
 0x35d   : > { %v1812_v31 = vmax.f32 %v4907_v20, 0.0  ;;  %v1813_v52 = vmax.f32 %v4908_v29, 0.0  ;;  %v1814_v41 = vmax.f32 %v4909_v44, 0.0  ;;  %v4912_v19 = vsub.f32 1.0, %v4872_v15 }
 0x35e   : > { %v1815_v5 = vmax.f32 %v4910_v30, 0.0  ;;  %v1816_v54 = vmax.f32 %v4911_v1, 0.0  ;;  %v4913_v24 = vsub.f32 1.0, %v3708_v39  ;;  %v4914_v46 = vsub.f32 1.0, %v4873_v16 }
 0x35f   : > { %v1817_v10 = vmax.f32 %v4912_v19, 0.0  ;;  %v4915_v29 = vsub.f32 1.0, %v3713_v47  ;;  %v4916_v14 = vsub.f32 1.0, %v4874_v9  ;;  %v4917_v23 = vsub.f32 1.0, %v3720_v27 }
 0x360   : > { %v1818_v11 = vmax.f32 %v4913_v24, 0.0  ;;  %v1819_v20 = vmax.f32 %v4914_v46, 0.0  ;;  %v4918_v38 = vsub.f32 1.0, %v4875_v34  ;;  %v4919_v15 = vsub.f32 1.0, %v3725_v58 }
 0x361   : > { %v1820_v4 = vmax.f32 %v4915_v29, 0.0  ;;  %v1821_v44 = vmax.f32 %v4916_v14, 0.0  ;;  %v1822_v30 = vmax.f32 %v4917_v23, 0.0  ;;  %v4920_v39 = vsub.f32 1.0, %v4876_v37 }
 0x362   : > { %v1823_v1 = vmax.f32 %v4918_v38, 0.0  ;;  %v1824_v19 = vmax.f32 %v4919_v15, 0.0  ;;  %v4921_v16 = vsub.f32 1.0, %v3730_v18  ;;  %v4922_v47 = vsub.f32 1.0, %v4877_v25 }
 0x363   : > { %v1825_v24 = vmax.f32 %v4920_v39, 0.0  ;;  %v4923_v9 = vsub.f32 1.0, %v3737_v49  ;;  %v4924_v27 = vsub.f32 1.0, %v4878_v51  ;;  %v4925_v34 = vsub.f32 1.0, %v3742_v36  ;;  %v4931_v51 = vld [vmem:[#allocation105_spill] sm:$0xff] }
 0x364   : > { %v1826_v46 = vmax.f32 %v4921_v16, 0.0  ;;  %v1827_v29 = vmax.f32 %v4922_v47, 0.0  ;;  %v4926_v58 = vsub.f32 1.0, %v4879_v28  ;;  %v4927_v37 = vsub.f32 1.0, %v3747_v33  ;;  %v4934_v28 = vld [vmem:[#allocation106_spill] sm:$0xff] }
 0x365   : > { %v1828_v14 = vmax.f32 %v4923_v9, 0.0  ;;  %v1829_v23 = vmax.f32 %v4924_v27, 0.0  ;;  %v1830_v38 = vmax.f32 %v4925_v34, 0.0  ;;  %v4928_v18 = vsub.f32 1.0, %v4880_v50  ;;  %v4937_v50 = vld [vmem:[#allocation107_spill] sm:$0xff] }
 0x366   : > { %v1831_v15 = vmax.f32 %v4926_v58, 0.0  ;;  %v1832_v39 = vmax.f32 %v4927_v37, 0.0  ;;  %v4929_v25 = vsub.f32 1.0, %v3754_v32  ;;  %v4930_v49 = vsub.f32 1.0, %v4881_v43  ;;  %v4940_v43 = vld [vmem:[#allocation108_spill] sm:$0xff] }
 0x367   : > { %v1833_v16 = vmax.f32 %v4928_v18, 0.0  ;;  %v4932_v27 = vsub.f32 1.0, %v4931_v51  ;;  %v4933_v36 = vsub.f32 1.0, %v4882_v26  ;;  %v4935_v58 = vsub.f32 1.0, %v4934_v28  ;;  %v4943_v26 = vld [vmem:[#allocation25_spill] sm:$0xff] }
 0x368   : > { %v1834_v47 = vmax.f32 %v4929_v25, 0.0  ;;  %v1835_v9 = vmax.f32 %v4930_v49, 0.0  ;;  %v4936_v33 = vsub.f32 1.0, %v4883_v35  ;;  %v4938_v18 = vsub.f32 1.0, %v4937_v50  ;;  %v4946_v35 = vld [vmem:[#allocation26_spill] sm:$0xff] }
 0x369   : > { %v1836_v42 = vmax.f32 %v4932_v27, 0.0  ;;  %v1837_v34 = vmax.f32 %v4933_v36, 0.0  ;;  %v1838_v7 = vmax.f32 %v4935_v58, 0.0  ;;  %v4939_v32 = vsub.f32 1.0, %v4884_v2  ;;  %v4949_v2 = vld [vmem:[#allocation27_spill] sm:$0xff] }
 0x36a   : > { %v1839_v37 = vmax.f32 %v4936_v33, 0.0  ;;  %v1840_v13 = vmax.f32 %v4938_v18, 0.0  ;;  %v4941_v49 = vsub.f32 1.0, %v4940_v43  ;;  %v4942_v51 = vsub.f32 1.0, %v4885_v61  ;;  %v4952_v61 = vld [vmem:[#allocation28_spill] sm:$0xff] }
 0x36b   : > { %v1841_v25 = vmax.f32 %v4939_v32, 0.0  ;;  %v4944_v36 = vsub.f32 1.0, %v4943_v26  ;;  %v4945_v28 = vsub.f32 1.0, %v4886_v45  ;;  %v4947_v33 = vsub.f32 1.0, %v4946_v35  ;;  %v4955_v45 = vld [vmem:[#allocation29_spill] sm:$0xff] }
 0x36c   : > { %v1842_v53 = vmax.f32 %v4941_v49, 0.0  ;;  %v1843_v27 = vmax.f32 %v4942_v51, 0.0  ;;  %v4948_v50 = vsub.f32 1.0, %v4887_v57  ;;  %v4950_v32 = vsub.f32 1.0, %v4949_v2  ;;  %v4958_v57 = vld [vmem:[#allocation32_spill] sm:$0xff] }
 0x36d   : > { %v1844_v63 = vmax.f32 %v4944_v36, 0.0  ;;  %v1845_v58 = vmax.f32 %v4945_v28, 0.0  ;;  %v1846_v22 = vmax.f32 %v4947_v33, 0.0  ;;  %v4951_v43 = vsub.f32 1.0, %v4888_v48 }
 0x36e   : > { %v1847_v18 = vmax.f32 %v4948_v50, 0.0  ;;  %v1848_v12 = vmax.f32 %v4950_v32, 0.0  ;;  %v4953_v51 = vsub.f32 1.0, %v4952_v61  ;;  %v4954_v26 = vsub.f32 1.0, %v4889_v8  ;;  %v4963_v8 = vld [vmem:[#allocation33_spill] sm:$0xff] }
 0x36f   : > { %v1849_v49 = vmax.f32 %v4951_v43, 0.0  ;;  %v4956_v28 = vsub.f32 1.0, %v4955_v45  ;;  %v4957_v35 = vsub.f32 1.0, %v4890_v56  ;;  %v4959_v50 = vsub.f32 1.0, %v4958_v57  ;;  %v4967_v57 = vld [vmem:[#allocation109_spill] sm:$0xff] }
 0x370   : > { %v1850_v0 = vmax.f32 %v4953_v51, 0.0  ;;  %v1851_v36 = vmax.f32 %v4954_v26, 0.0  ;;  %v4960_v2 = vsub.f32 1.0, %v4891_v21  ;;  %v4961_v48 = vsub.f32 1.0, %v3811_v59 }
 0x371   : > { %v1852_v6 = vmax.f32 %v4956_v28, 0.0  ;;  %v1853_v33 = vmax.f32 %v4957_v35, 0.0  ;;  %v1854_v60 = vmax.f32 %v4959_v50, 0.0  ;;  %v4962_v61 = vsub.f32 1.0, %v4892_v3  ;;  %v4965_v28 = vld [vmem:[#allocation37_spill] sm:$0xff]  ;;  %v4971_v3 = vld [vmem:[#allocation110_spill] sm:$0xff] }
 0x372   : > { %v1855_v32 = vmax.f32 %v4960_v2, 0.0  ;;  %v1856_v43 = vmax.f32 %v4961_v48, 0.0  ;;  %v4964_v26 = vsub.f32 1.0, %v4963_v8  ;;  %v4966_v56 = vsub.f32 1.0, %v4965_v28  ;;  %v4969_v2 = vld [vmem:[#allocation41_spill] sm:$0xff] }
 0x373   : > { %v1857_v51 = vmax.f32 %v4962_v61, 0.0  ;;  %v4968_v50 = vsub.f32 1.0, %v4967_v57  ;;  %v4970_v59 = vsub.f32 1.0, %v4969_v2  ;;  %v4972_v61 = vsub.f32 1.0, %v4971_v3  ;;  %v4975_v57 = vld [vmem:[#allocation111_spill] sm:$0xff] }
 0x374   : > { %v1858_v45 = vmax.f32 %v4964_v26, 0.0  ;;  %v1859_v35 = vmax.f32 %v4966_v56, 0.0  ;;  %v4973_v26 = vld [vmem:[#allocation43_spill] sm:$0xff] }
 0x375   : > { %v1860_v21 = vmax.f32 %v4968_v50, 0.0  ;;  %v1861_v48 = vmax.f32 %v4970_v59, 0.0  ;;  %v1862_v8 = vmax.f32 %v4972_v61, 0.0  ;;  %v4974_v28 = vsub.f32 1.0, %v4973_v26  ;;  %v4977_v59 = vld [vmem:[#allocation51_spill] sm:$0xff]  ;;  %v4979_v26 = vld [vmem:[#allocation112_spill] sm:$0xff] }
 0x376   : > { %v4976_v50 = vsub.f32 1.0, %v4975_v57  ;;  %v4978_v3 = vsub.f32 1.0, %v4977_v59 }
 0x377   : > { %v1863_v56 = vmax.f32 %v4974_v28, 0.0  ;;  %v4980_v28 = vsub.f32 1.0, %v4979_v26  ;;  %v4983_v26 = vld [vmem:[#allocation113_spill] sm:$0xff] }
 0x378   : > { %v1864_v2 = vmax.f32 %v4976_v50, 0.0  ;;  %v1865_v61 = vmax.f32 %v4978_v3, 0.0  ;;  %v4981_v50 = vld [vmem:[#allocation50_spill] sm:$0xff] }
 0x379   : > { %v1866_v57 = vmax.f32 %v4980_v28, 0.0  ;;  %v4982_v59 = vsub.f32 1.0, %v4981_v50  ;;  %v4984_v28 = vsub.f32 1.0, %v4983_v26  ;;  %v4986_v26 = vld [vmem:[#allocation5_spill] sm:$0xff] }
 0x37b   : > { %v1867_v3 = vmax.f32 %v4982_v59, 0.0  ;;  %v1868_v50 = vmax.f32 %v4984_v28, 0.0  ;;  %v4985_v59 = vld [vmem:[#allocation80_spill] sm:$0xff] }
 0x37c   : > { %v4025_v28 = vmul.f32 %v4986_v26, %v4985_v59  ;;  %v4988_v26 = vld [vmem:[#allocation38_spill] sm:$0xff] }
 0x37d   : > { %v4028_v59 = vmul.f32 %v1808_v55, %v4988_v26  ;;  %v4992_v55 = vld [vmem:[#allocation55_spill] sm:$0xff] }
 0x37e   : > { %4987 = vst [vmem:[#allocation7_spill] sm:$0xff] %v4025_v28  ;;  %v4990_v28 = vld [vmem:[#allocation31_spill] sm:$0xff] }
 0x37f   : > { %4989 = vst [vmem:[#allocation8_spill] sm:$0xff] %v4028_v59  ;;  %v4031_v26 = vmul.f32 %v1809_v17, %v4990_v28  ;;  %v4034_v59 = vmul.f32 %v1810_v62, %v4992_v55  ;;  %v4994_v17 = vld [vmem:[#allocation42_spill] sm:$0xff]  ;;  %v4998_v62 = vld [vmem:[#allocation36_spill] sm:$0xff] }
 0x380   : > { %v4037_v28 = vmul.f32 %v1811_v40, %v4994_v17  ;;  %v5000_v17 = vld [vmem:[#allocation82_spill] sm:$0xff] }
 0x381   : > { %4991 = vst [vmem:[#allocation9_spill] sm:$0xff] %v4031_v26  ;;  %4993 = vst [vmem:[#allocation10_spill] sm:$0xff] %v4034_v59  ;;  %v4996_v26 = vld [vmem:[#allocation81_spill] sm:$0xff]  ;;  %v4043_v59 = vmul.f32 %v1813_v52, %v4998_v62  ;;  %v4046_v40 = vmul.f32 %v1814_v41, %v5000_v17  ;;  %v5006_v52 = vld [vmem:[#allocation39_spill] sm:$0xff] }
 0x382   : > { %4995 = vst [vmem:[#allocation11_spill] sm:$0xff] %v4037_v28  ;;  %v4040_v55 = vmul.f32 %v1812_v31, %v4996_v26  ;;  %v5002_v28 = vld [vmem:[#allocation2_spill] sm:$0xff]  ;;  %v5004_v31 = vld [vmem:[#allocation83_spill] sm:$0xff]  ;;  %v4055_v62 = vmul.f32 %v1817_v10, %v5006_v52  ;;  %v5010_v41 = vld [vmem:[#allocation56_spill] sm:$0xff] }
 0x383   : > { %4999 = vst [vmem:[#allocation13_spill] sm:$0xff] %v4043_v59  ;;  %5001 = vst [vmem:[#allocation14_spill] sm:$0xff] %v4046_v40  ;;  %v4049_v26 = vmul.f32 %v1815_v5, %v5002_v28  ;;  %v5008_v59 = vld [vmem:[#allocation84_spill] sm:$0xff]  ;;  %v4061_v40 = vmul.f32 %v1819_v20, %v5010_v41  ;;  %v5011_v5 = vld [vmem:[#allocation85_spill] sm:$0xff] }
 0x384   : > { %4997 = vst [vmem:[#allocation12_spill] sm:$0xff] %v4040_v55  ;;  %v4052_v55 = vmul.f32 %v1816_v54, %v5004_v31  ;;  %5007 = vst [vmem:[#allocation19_spill] sm:$0xff] %v4055_v62  ;;  %v4058_v17 = vmul.f32 %v1818_v11, %v5008_v59  ;;  %v4064_v28 = vmul.f32 %v1820_v4, %v5011_v5  ;;  %v5013_v54 = vld [vmem:[#allocation44_spill] sm:$0xff]  ;;  %v5014_v10 = vld [vmem:[#allocation15_spill] sm:$0xff] }
 0x385   : > { %5003 = vst [vmem:[#allocation16_spill] sm:$0xff] %v4049_v26  ;;  %v5012_v26 = vld [vmem:[#allocation57_spill] sm:$0xff]  ;;  %v4073_v52 = vmul.f32 %v1823_v1, %v5014_v10  ;;  %v5016_v59 = vld [vmem:[#allocation18_spill] sm:$0xff]  ;;  %v5018_v4 = vld [vmem:[#allocation23_spill] sm:$0xff] }
 0x386   : > { %5005 = vst [vmem:[#allocation17_spill] sm:$0xff] %v4052_v55  ;;  %5009 = vst [vmem:[#allocation20_spill] sm:$0xff] %v4058_v17  ;;  %v4067_v31 = vmul.f32 %v1821_v44, %v5012_v26  ;;  %v4070_v55 = vmul.f32 %v1822_v30, %v5013_v54  ;;  %v5015_v62 = vld [vmem:[#allocation45_spill] sm:$0xff]  ;;  %v4079_v17 = vmul.f32 %v1825_v24, %v5016_v59  ;;  %v5017_v20 = vld [vmem:[#allocation86_spill] sm:$0xff] }
 0x387   : > { %v4076_v11 = vmul.f32 %v1824_v19, %v5015_v62  ;;  %v4082_v41 = vmul.f32 %v1826_v46, %v5017_v20  ;;  %v4085_v5 = vmul.f32 %v1827_v29, %v5018_v4  ;;  %v5019_v44 = vld [vmem:[#allocation87_spill] sm:$0xff]  ;;  %v5020_v30 = vld [vmem:[#allocation46_spill] sm:$0xff]  ;;  %v5021_v1 = vld [vmem:[#allocation88_spill] sm:$0xff] }
 0x388   : > { %v4088_v26 = vmul.f32 %v1828_v14, %v5019_v44  ;;  %v4091_v54 = vmul.f32 %v1829_v23, %v5020_v30  ;;  %v4094_v10 = vmul.f32 %v1830_v38, %v5021_v1  ;;  %v5022_v19 = vld [vmem:[#allocation47_spill] sm:$0xff]  ;;  %v5023_v24 = vld [vmem:[#allocation89_spill] sm:$0xff]  ;;  %v5024_v46 = vld [vmem:[#allocation48_spill] sm:$0xff] }
 0x389   : > { %v4097_v62 = vmul.f32 %v1831_v15, %v5022_v19  ;;  %v4100_v59 = vmul.f32 %v1832_v39, %v5023_v24  ;;  %v4103_v20 = vmul.f32 %v1833_v16, %v5024_v46  ;;  %v5025_v29 = vld [vmem:[#allocation90_spill] sm:$0xff]  ;;  %v5026_v14 = vld [vmem:[#allocation49_spill] sm:$0xff]  ;;  %v5027_v23 = vld [vmem:[#allocation91_spill] sm:$0xff] }
 0x38a   : > { %v4106_v4 = vmul.f32 %v1834_v47, %v5025_v29  ;;  %v4109_v44 = vmul.f32 %v1835_v9, %v5026_v14  ;;  %v4112_v30 = vmul.f32 %v1836_v42, %v5027_v23  ;;  %v5028_v38 = vld [vmem:[#allocation61_spill] sm:$0xff]  ;;  %v5029_v15 = vld [vmem:[#allocation92_spill] sm:$0xff]  ;;  %v5030_v39 = vld [vmem:[#allocation62_spill] sm:$0xff] }
 0x38b   : > { %v4115_v1 = vmul.f32 %v1837_v34, %v5028_v38  ;;  %v4118_v19 = vmul.f32 %v1838_v7, %v5029_v15  ;;  %v4121_v24 = vmul.f32 %v1839_v37, %v5030_v39  ;;  %v5031_v16 = vld [vmem:[#allocation93_spill] sm:$0xff]  ;;  %v5032_v47 = vld [vmem:[#allocation63_spill] sm:$0xff]  ;;  %v5033_v9 = vld [vmem:[#allocation94_spill] sm:$0xff] }
 0x38c   : > { %v4124_v46 = vmul.f32 %v1840_v13, %v5031_v16  ;;  %v4127_v29 = vmul.f32 %v1841_v25, %v5032_v47  ;;  %v4130_v14 = vmul.f32 %v1842_v53, %v5033_v9  ;;  %v5034_v42 = vld [vmem:[#allocation3_spill] sm:$0xff]  ;;  %v5036_v7 = vld [vmem:[#allocation64_spill] sm:$0xff]  ;;  %v5039_v25 = vld [vmem:[#allocation58_spill] sm:$0xff] }
 0x38d   : > { %v4133_v23 = vmul.f32 %v1843_v27, %v5034_v42  ;;  %v5035_v34 = vld [vmem:[#allocation95_spill] sm:$0xff]  ;;  %v4139_v15 = vmul.f32 %v1845_v58, %v5036_v7  ;;  %v5037_v37 = vld [vmem:[#allocation96_spill] sm:$0xff]  ;;  %v4148_v47 = vmul.f32 %v1848_v12, %v5039_v25  ;;  %v5040_v53 = vld [vmem:[#allocation65_spill] sm:$0xff] }
 0x38e   : > { %v4136_v38 = vmul.f32 %v1844_v63, %v5035_v34  ;;  %v4142_v39 = vmul.f32 %v1846_v22, %v5037_v37  ;;  %v5038_v13 = vld [vmem:[#allocation40_spill] sm:$0xff]  ;;  %v4151_v9 = vmul.f32 %v1849_v49, %v5040_v53  ;;  %v5041_v27 = vld [vmem:[#allocation59_spill] sm:$0xff]  ;;  %v5042_v63 = vld [vmem:[#allocation66_spill] sm:$0xff] }
 0x38f   : > { %v4145_v16 = vmul.f32 %v1847_v18, %v5038_v13  ;;  %v4154_v42 = vmul.f32 %v1850_v0, %v5041_v27  ;;  %v4157_v34 = vmul.f32 %v1851_v36, %v5042_v63  ;;  %v5043_v58 = vld [vmem:[#allocation97_spill] sm:$0xff]  ;;  %v5044_v22 = vld [vmem:[#allocation34_spill] sm:$0xff]  ;;  %v5046_v12 = vld [vmem:[#allocation67_spill] sm:$0xff] }
 0x390   : > { %v4160_v7 = vmul.f32 %v1852_v6, %v5043_v58  ;;  %v4163_v37 = vmul.f32 %v1853_v33, %v5044_v22  ;;  %v5045_v18 = vld [vmem:[#allocation98_spill] sm:$0xff]  ;;  %v4169_v25 = vmul.f32 %v1855_v32, %v5046_v12  ;;  %v5047_v49 = vld [vmem:[#allocation99_spill] sm:$0xff]  ;;  %v5048_v0 = vld [vmem:[#allocation68_spill] sm:$0xff] }
 0x391   : > { %v4166_v13 = vmul.f32 %v1854_v60, %v5045_v18  ;;  %v4172_v53 = vmul.f32 %v1856_v43, %v5047_v49  ;;  %v4175_v27 = vmul.f32 %v1857_v51, %v5048_v0  ;;  %v5049_v36 = vld [vmem:[#allocation100_spill] sm:$0xff]  ;;  %v5050_v6 = vld [vmem:[#allocation35_spill] sm:$0xff]  ;;  %v5051_v33 = vld [vmem:[#allocation101_spill] sm:$0xff] }
 0x392   : > { %v4178_v63 = vmul.f32 %v1858_v45, %v5049_v36  ;;  %v4181_v58 = vmul.f32 %v1859_v35, %v5050_v6  ;;  %v4184_v22 = vmul.f32 %v1860_v21, %v5051_v33  ;;  %v5052_v60 = vld [vmem:[#allocation69_spill] sm:$0xff]  ;;  %v5054_v32 = vld [vmem:[#allocation102_spill] sm:$0xff]  ;;  %v5057_v51 = vld [vmem:[#allocation103_spill] sm:$0xff] }
 0x393   : > { %v4187_v18 = vmul.f32 %v1861_v48, %v5052_v60  ;;  %v4190_v12 = vmul.f32 %v1862_v8, %v5054_v32  ;;  %v5055_v43 = vld [vmem:[#allocation70_spill] sm:$0xff]  ;;  %v4196_v0 = vmul.f32 %v1864_v2, %v5057_v51  ;;  %v5059_v45 = vld [vmem:[#allocation53_spill] sm:$0xff]  ;;  %v5061_v35 = vld [vmem:[#allocation60_spill] sm:$0xff] }
 0x394   : > { %v4193_v49 = vmul.f32 %v1863_v56, %v5055_v43  ;;  %v4199_v36 = vmul.f32 %v1865_v61, %v5059_v45  ;;  %v4202_v6 = vmul.f32 %v1866_v57, %v5061_v35  ;;  %v5063_v21 = vld [vmem:[#allocation54_spill] sm:$0xff]  ;;  %v5065_v48 = vld [vmem:[#allocation104_spill] sm:$0xff]  ;;  %v5067_v8 = vld [vmem:[#allocation7_spill] sm:$0xff] }
 0x395   : > { %5053 = vst [vmem:[#allocation21_spill] sm:$0xff] %v4187_v18  ;;  %5058 = vst [vmem:[#allocation24_spill] sm:$0xff] %v4196_v0  ;;  %v4205_v33 = vmul.f32 %v1867_v3, %v5063_v21  ;;  %v4208_v60 = vmul.f32 %v1868_v50, %v5065_v48  ;;  %v5068_v32 = vld [vmem:[#allocation8_spill] sm:$0xff]  ;;  %v5071_v2 = vld [vmem:[#allocation30_spill] sm:$0xff] }
 0x396   : > { %5056 = vst [vmem:[#allocation22_spill] sm:$0xff] %v4193_v49  ;;  %5060 = vst [vmem:[#allocation71_spill] sm:$0xff] %v4199_v36  ;;  %v2124_v18 = vpack.c.bf16 %v5068_v32, %v5067_v8  ;;  %v5069_v56 = vld [vmem:[#allocation52_spill] sm:$0xff]  ;;  %v5072_v51 = vld [vmem:[#allocation6_spill] sm:$0xff] }
 0x397   : > { %5062 = vst [vmem:[#allocation72_spill] sm:$0xff] %v4202_v6  ;;  %5064 = vst [vmem:[#allocation73_spill] sm:$0xff] %v4205_v33  ;;  %v5070_v43 = vld [vmem:[#allocation4_spill] sm:$0xff]  ;;  %v1871_v0 = vmul.f32 %v5072_v51, %v5071_v2  ;;  %v5073_v61 = vld [vmem:[#allocation10_spill] sm:$0xff]  ;;  %v2140_v2 = vpack.c.bf16 %v4076_v11, %v4070_v55  ;;  %v2154_v55 = vpack.c.bf16 %v4109_v44, %v4103_v20 }
 0x398   : > { %5066 = vst [vmem:[#allocation74_spill] sm:$0xff] %v4208_v60  ;;  %v1869_v49 = vmul.f32 %v5070_v43, %v5069_v56  ;;  %v5074_v45 = vld [vmem:[#allocation12_spill] sm:$0xff]  ;;  %v5075_v57 = vld [vmem:[#allocation9_spill] sm:$0xff]  ;;  %v5076_v35 = vld [vmem:[#allocation11_spill] sm:$0xff]  ;;  %2125 = vmatprep.subr.bf16.mxu1 %v2124_v18  ;;  %v2146_v18 = vpack.c.bf16 %v4085_v5, %v4079_v17  ;;  %v2160_v17 = vpack.c.bf16 %v4136_v38, %v4130_v14 }
 0x399   : > { %v2128_v36 = vpack.c.bf16 %v5074_v45, %v5073_v61  ;;  %v2130_v6 = vpack.c.bf16 %v5076_v35, %v5075_v57  ;;  %v5077_v3 = vld [vmem:[#allocation14_spill] sm:$0xff]  ;;  %v5078_v21 = vld [vmem:[#allocation17_spill] sm:$0xff]  ;;  %v5080_v48 = vld [vmem:[#allocation16_spill] sm:$0xff]  ;;  %v2142_v61 = vpack.c.bf16 %v4073_v52, %v4067_v31  ;;  %v2144_v45 = vpack.c.bf16 %v4088_v26, %v4082_v41 }
 0x39a   : > { %v2132_v33 = vpack.c.bf16 %v5078_v21, %v5077_v3  ;;  %v5079_v50 = vld [vmem:[#allocation13_spill] sm:$0xff]  ;;  %v5081_v8 = vld [vmem:[#allocation20_spill] sm:$0xff]  ;;  %v5082_v56 = vld [vmem:[#allocation19_spill] sm:$0xff]  ;;  %v2126_v51 = vpack.c.bf16 %v1871_v0, %v1869_v49  ;;  %v2148_v57 = vpack.c.bf16 %v4100_v59, %v4094_v10  ;;  %v2156_v31 = vpack.c.bf16 %v4124_v46, %v4118_v19 }
 0x39b   : > { %v2134_v60 = vpack.c.bf16 %v5080_v48, %v5079_v50  ;;  %v2136_v32 = vpack.c.bf16 %v4064_v28, %v5081_v8  ;;  %v2138_v43 = vpack.c.bf16 %v4061_v40, %v5082_v56  ;;  %v2150_v28 = vpack.c.bf16 %v4097_v62, %v4091_v54 }
 0x39c   : > { %v2152_v40 = vpack.c.bf16 %v4112_v30, %v4106_v4  ;;  %2127 = vmatpush1.bf16.msra.mxu1 %v2126_v51  ;;  %v2158_v52 = vpack.c.bf16 %v4121_v24, %v4115_v1  ;;  %v2162_v11 = vpack.c.bf16 %v4133_v23, %v4127_v29  ;;  %v2164_v41 = vpack.c.bf16 %v4148_v47, %v4142_v39  ;;  %v5083_v4 = vld [vmem:[#allocation24_spill] sm:$0xff]  ;;  %v5084_v30 = vld [vmem:[#allocation21_spill] sm:$0xff] }
 0x39d   : > { %2129 = vmatprep.subr.bf16.mxu1 %v2128_v36  ;;  %v2166_v5 = vpack.c.bf16 %v4145_v16, %v4139_v15  ;;  %v2168_v26 = vpack.c.bf16 %v4160_v7, %v4154_v42  ;;  %v2170_v54 = vpack.c.bf16 %v4157_v34, %v4151_v9  ;;  %v2172_v10 = vpack.c.bf16 %v4172_v53, %v4166_v13  ;;  %v5085_v1 = vld [vmem:[#allocation22_spill] sm:$0xff]  ;;  %v5088_v14 = vld [vmem:[#allocation71_spill] sm:$0xff] }
 0x39e   : > { %v2174_v62 = vpack.c.bf16 %v4169_v25, %v4163_v37  ;;  %v2176_v59 = vpack.c.bf16 %v4184_v22, %v4178_v63  ;;  %v2178_v20 = vpack.c.bf16 %v4181_v58, %v4175_v27  ;;  %v2180_v44 = vpack.c.bf16 %v5083_v4, %v4190_v12  ;;  %v5086_v24 = vld [vmem:[#allocation72_spill] sm:$0xff]  ;;  %v5089_v23 = vld [vmem:[#allocation73_spill] sm:$0xff]  ;;  %v1933_v15 = vld [vmem:[%s3612_s18] sm:$0xff] }
 0x39f   : > { %v2182_v19 = vpack.c.bf16 %v5085_v1, %v5084_v30  ;;  %v5087_v46 = vld [vmem:[#allocation74_spill] sm:$0xff]  ;;  %v2186_v38 = vpack.c.bf16 %v5089_v23, %v5088_v14 }
 0x3a0   : > { %v2184_v29 = vpack.c.bf16 %v5087_v46, %v5086_v24  ;;  %2131 = vmatpush1.bf16.msra.mxu1 %v2130_v6 }
 0x3a1   : > { %2133 = vmatprep.subr.bf16.mxu1 %v2132_v33 }
 0x3a4   : > { %2135 = vmatpush1.bf16.msra.mxu1 %v2134_v60 }
 0x3a5   : > { %2137 = vmatprep.subr.bf16.mxu1 %v2136_v32 }
 0x3a8   : > { %2139 = vmatpush1.bf16.msra.mxu1 %v2138_v43 }
 0x3a9   : > { %2141 = vmatprep.subr.bf16.mxu1 %v2140_v2 }
 0x3ac   : > { %2143 = vmatpush1.bf16.msra.mxu1 %v2142_v61 }
 0x3ad   : > { %2145 = vmatprep.subr.bf16.mxu1 %v2144_v45 }
 0x3b0   : > { %2147 = vmatpush1.bf16.msra.mxu1 %v2146_v18 }
 0x3b1   : > { %2149 = vmatprep.subr.bf16.mxu1 %v2148_v57 }
 0x3b4   : > { %2151 = vmatpush1.bf16.msra.mxu1 %v2150_v28 }
 0x3b5   : > { %2153 = vmatprep.subr.bf16.mxu1 %v2152_v40 }
 0x3b8   : > { %2155 = vmatpush1.bf16.msra.mxu1 %v2154_v55 }
 0x3b9   : > { %2157 = vmatprep.subr.bf16.mxu1 %v2156_v31 }
 0x3bc   : > { %2159 = vmatpush1.bf16.msra.mxu1 %v2158_v52 }
 0x3bd   : > { %2161 = vmatprep.subr.bf16.mxu1 %v2160_v17 }
 0x3c0   : > { %2163 = vmatpush1.bf16.msra.mxu1 %v2162_v11 }
 0x3c1   : > { %2165 = vmatprep.subr.bf16.mxu1 %v2164_v41 }
 0x3c4   : > { %2167 = vmatpush1.bf16.msra.mxu1 %v2166_v5 }
 0x3c5   : > { %2169 = vmatprep.subr.bf16.mxu1 %v2168_v26 }
 0x3c8   : > { %2171 = vmatpush1.bf16.msra.mxu1 %v2170_v54 }
 0x3c9   : > { %2173 = vmatprep.subr.bf16.mxu1 %v2172_v10 }
 0x3cc   : > { %2175 = vmatpush1.bf16.msra.mxu1 %v2174_v62 }
 0x3cd   : > { %2177 = vmatprep.subr.bf16.mxu1 %v2176_v59 }
 0x3d0   : > { %2179 = vmatpush1.bf16.msra.mxu1 %v2178_v20 }
 0x3d1   : > { %2181 = vmatprep.subr.bf16.mxu1 %v2180_v44 }
 0x3d4   : > { %2183 = vmatpush1.bf16.msra.mxu1 %v2182_v19 }
 0x3d5   : > { %2185 = vmatprep.subr.bf16.mxu1 %v2184_v29 }
 0x3d8   : > { %2187 = vmatpush1.bf16.msra.mxu1 %v2186_v38 }
 0x3db   : > { %2000 = vmatmul.mubr.f32.vlgmr.msra.gmra.mrb[0].mxu1 %v1933_v15 }
 0x4ae   : > { %v2001_v39 = vpop.f32.mrb[0].mxu1 }
 0x4af   : > { %2006 = vst [vmem:[%s349_s21] sm:$0xff] %v2001_v39  ;;  %v2003_v16 = vpop.f32.mrb[1].mxu1 }
 0x4b0   : > { %2007 = vst [vmem:[%s349_s21 + $0x8] sm:$0xff] %v2003_v16 }
 0x4b1 PF: > { %s19_s30 = sadd.s32 1, %s2218_s30  }
 0x4b2   : > { %p16_p4 = scmp.ge.s32.totalorder %s19_s30, 4  }
 0x4b4   :  { %18 = sbr.rel (!%p16_p4) target bundleno = 1 (0x1), region = 89 }

</bundles_post_ra>
